<compile_context>
chip_gen: v6e
topology: v6e:2x2x1
jax: 0.10.0
libtpu: 0.0.40
codegen_flags: <defaults>
</compile_context>

<pallas_src>
import jax
import jax.numpy as jnp
from jax.experimental import pallas as pl
from jax.experimental.pallas import tpu as pltpu

LANE = 128
VMEM_LIMIT_BYTES = 48 * 1024 * 1024  # safe on v5e/v6e (128 MiB) and v7x (64 MiB physical)


def _round_up(n, m):
    return ((n + m - 1) // m) * m


# ----------------------------------------------------------------------------- kernel
def plasticc_kernel(x_ref,
                    w1_ref, t1_ref,
                    w2_ref, t2_ref,
                    w3_ref, t3_ref,
                    w4_ref, t4_ref,
                    w5_ref, b5_ref,
                    o_ref):
    # x arrives pre-cast to bf16 (halves the input DMA); accumulation, BN shift,
    # ReLU and log-softmax stay in f32.
    h = x_ref[...]

    def block(h, w_ref, t_ref):
        y = jnp.dot(h, w_ref[...], preferred_element_type=jnp.float32)
        y = jnp.maximum(y + t_ref[...], 0.0)
        return y.astype(jnp.bfloat16)

    # Layer 1 has K=16 (MXU utilization ~6-12%) but is <2% of total FLOPs;
    # left as-is on purpose.
    h = block(h, w1_ref, t1_ref)
    h = block(h, w2_ref, t2_ref)
    h = block(h, w3_ref, t3_ref)
    h = block(h, w4_ref, t4_ref)

    logits = jnp.dot(h, w5_ref[...], preferred_element_type=jnp.float32) + b5_ref[...]

    # log_softmax over the (padded) class axis; padded classes carry bias -1e30,
    # so exp() of them is exactly 0 and the log-sum-exp is unchanged.
    m = jnp.max(logits, axis=1, keepdims=True)
    z = logits - m
    lse = jnp.log(jnp.sum(jnp.exp(z), axis=1, keepdims=True))
    o_ref[...] = (z - lse).astype(o_ref.dtype)


# ----------------------------------------------------------------------------- wrapper
def _pick_batch_tile(B, tb_max):
    """Batch tile: big enough to amortize per-grid-step overhead, >=2 grid steps when
    the batch allows it (keeps both v7x TensorCores busy; no-op on v5e/v6e)."""
    if B <= 128:
        return _round_up(B, 16)                      # tiny-batch latency path: one tile
    if B <= 512:
        return _round_up(pl.cdiv(B, 2), 16)          # two tiles, 16-row (bf16) aligned
    return min(tb_max, max(256, _round_up(pl.cdiv(B, 2), 256)))  # multiples of 256


def plasticc_forward(x, params, num_classes, tb_max=4096, out_dtype=jnp.float32,
                     single_buffer_weights=True):
    """x: (B, input_size) f32. params: folded kernel params (see fold_params)."""
    B, feat = x.shape
    c_pad = params["b5"].shape[1]

    tb = _pick_batch_tile(B, tb_max)
    b_pad = _round_up(B, tb)

    # Cast once to bf16 (MXU input dtype) and pad the batch to a whole number of tiles.
    xb = x.astype(jnp.bfloat16)
    if b_pad != B:
        xb = jnp.pad(xb, ((0, b_pad - B), (0, 0)))

    grid = (b_pad // tb,)
    args = (xb,
            params["w1"], params["t1"],
            params["w2"], params["t2"],
            params["w3"], params["t3"],
            params["w4"], params["t4"],
            params["w5"], params["b5"])

    def build(single_buf):
        def resident(arr):
            # Full-array block, constant index_map: DMA'd once, resident across batch
            # tiles. Single-buffered when supported (weights never change per step).
            if single_buf:
                return pl.BlockSpec(arr.shape, lambda i: (0, 0),
                                    pipeline_mode=pl.Buffered(1))
            return pl.BlockSpec(arr.shape, lambda i: (0, 0))

        in_specs = [pl.BlockSpec((tb, feat), lambda i: (i, 0))]
        in_specs += [resident(a) for a in args[1:]]

        return pl.pallas_call(
            plasticc_kernel,
            out_shape=jax.ShapeDtypeStruct((b_pad, c_pad), out_dtype),
            grid=grid,
            in_specs=in_specs,
            out_specs=pl.BlockSpec((tb, c_pad), lambda i: (i, 0)),
            compiler_params=pltpu.CompilerParams(
                dimension_semantics=("parallel",),
                vmem_limit_bytes=VMEM_LIMIT_BYTES),
        )

    if single_buffer_weights:
        try:
            out = build(True)(*args)
        except Exception:
            # Installed Pallas rejects buffer_count=1 on top-level specs; use default.
            out = build(False)(*args)
    else:
        out = build(False)(*args)

    # NOTE: this slice is a separate HBM pass over the padded (b_pad, 128) buffer;
    # downstream consumers that tolerate the padded layout should consume `out` directly.
    return out[:B, :num_classes]


# ----------------------------------------------------------------------------- params
def make_raw_params(key, input_size, hidden_size, num_classes):
    """Deterministic synthetic parameters mirroring PlasticcNet.__init__ shapes."""
    ks = jax.random.split(key, 22)

    def linear_w(k, out_f, in_f):
        # PyTorch nn.Linear weight is (out, in); store transposed (in, out).
        w = jax.random.normal(k, (out_f, in_f), jnp.float32) * 0.05
        return w.T

    raw = {}
    in_dims = (input_size, hidden_size, hidden_size, hidden_size)
    idx = 0
    for i, in_f in zip((1, 2, 3, 4), in_dims):
        raw[f"w{i}_t"] = linear_w(ks[idx], hidden_size, in_f); idx += 1
        raw[f"gamma{i}"] = 1.0 + 0.1 * jax.random.normal(ks[idx], (hidden_size,), jnp.float32); idx += 1
        raw[f"beta{i}"] = 0.1 * jax.random.normal(ks[idx], (hidden_size,), jnp.float32); idx += 1
        raw[f"rmean{i}"] = 0.1 * jax.random.normal(ks[idx], (hidden_size,), jnp.float32); idx += 1
        raw[f"rvar{i}"] = jax.random.uniform(ks[idx], (hidden_size,), jnp.float32, 0.5, 1.5); idx += 1
    raw["w5_t"] = linear_w(ks[idx], num_classes, hidden_size); idx += 1
    raw["b5"] = 0.05 * jax.random.normal(ks[idx], (num_classes,), jnp.float32)
    return raw


def fold_params(raw, num_classes, eps=1e-5):
    """Fold eval-mode BatchNorm into the weights, cast to bf16, pad the class dim."""
    p = {}
    for i in (1, 2, 3, 4):
        scale = raw[f"gamma{i}"] / jnp.sqrt(raw[f"rvar{i}"] + eps)
        shift = raw[f"beta{i}"] - raw[f"rmean{i}"] * scale
        p[f"w{i}"] = (raw[f"w{i}_t"] * scale[None, :]).astype(jnp.bfloat16)
        p[f"t{i}"] = shift.reshape(1, -1).astype(jnp.float32)

    hidden = raw["w5_t"].shape[0]
    c_pad = _round_up(num_classes, LANE)
    w5 = jnp.zeros((hidden, c_pad), jnp.float32).at[:, :num_classes].set(raw["w5_t"])
    # Padded classes get -1e30 bias; must stay f32 and be added AFTER the f32 matmul.
    b5 = jnp.full((1, c_pad), -1e30, jnp.float32).at[0, :num_classes].set(raw["b5"])
    p["w5"] = w5.astype(jnp.bfloat16)
    p["b5"] = b5
    return p


# ----------------------------------------------------------------------------- references
def reference_bf16(x, p, num_classes):
    """Pure-JAX mirror of the exact kernel math (folded bf16 weights, f32 accumulation)."""
    h = x.astype(jnp.bfloat16)
    for i in (1, 2, 3, 4):
        y = jnp.dot(h, p[f"w{i}"], preferred_element_type=jnp.float32) + p[f"t{i}"]
        h = jnp.maximum(y, 0.0).astype(jnp.bfloat16)
    logits = jnp.dot(h, p["w5"], preferred_element_type=jnp.float32) + p["b5"]
    return jax.nn.log_softmax(logits, axis=1)[:, :num_classes]


def reference_f32(x, raw, eps=1e-5):
    """Full-precision reference matching the original PyTorch eval-mode semantics."""
    h = x
    for i in (1, 2, 3, 4):
        h = h @ raw[f"w{i}_t"]
        scale = raw[f"gamma{i}"] / jnp.sqrt(raw[f"rvar{i}"] + eps)
        shift = raw[f"beta{i}"] - raw[f"rmean{i}"] * scale
        h = jnp.maximum(h * scale + shift, 0.0)
    logits = h @ raw["w5_t"] + raw["b5"]
    return jax.nn.log_softmax(logits, axis=1)


# ----------------------------------------------------------------------------- main
if __name__ == "__main__":
    key = jax.random.PRNGKey(0)
    kx, kp, kx2 = jax.random.split(key, 3)

    batch, input_size, hidden_size, num_classes = 8, 16, 256, 14
    raw = make_raw_params(kp, input_size, hidden_size, num_classes)
    params = fold_params(raw, num_classes)

    # --- small batch (single-tile path) -------------------------------------
    x = jax.random.normal(kx, (batch, input_size), jnp.float32)
    out = jax.block_until_ready(plasticc_forward(x, params, num_classes))
    assert out.shape == (batch, num_classes)

    ref_bf = reference_bf16(x, params, num_classes)
    assert jnp.allclose(out, ref_bf, atol=2e-3, rtol=2e-3), "mismatch vs bf16 mirror (B=8)"

    # Semantic check against the full-f32 eval-mode PlasticcNet math
    # (loose tolerance: weights are bf16 in the kernel).
    ref_f32 = reference_f32(x, raw)
    assert jnp.allclose(out, ref_f32, atol=1e-1), "mismatch vs f32 semantics (B=8)"

    # --- moderate batch (multi-tile path: grid >= 2, exercises batch pipeline /
    #     megacore split and the batch-padding logic) ------------------------
    batch2 = 600
    x2 = jax.random.normal(kx2, (batch2, input_size), jnp.float32)
    out2 = jax.block_until_ready(plasticc_forward(x2, params, num_classes))
    assert out2.shape == (batch2, num_classes)
    ref_bf2 = reference_bf16(x2, params, num_classes)
    assert jnp.allclose(out2, ref_bf2, atol=2e-3, rtol=2e-3), "mismatch vs bf16 mirror (B=600)"

    print("KERNEL_OK")
</pallas_src>

<mosaic_0001>
module attributes {stable_mosaic.version = 11 : i64} {
  func.func @plasticc_kernel(%arg0: i32, %arg1: memref<16x16xbf16, #tpu.memory_space<vmem>>, %arg2: memref<16x256xbf16, #tpu.memory_space<vmem>>, %arg3: memref<1x256xf32, #tpu.memory_space<vmem>>, %arg4: memref<256x256xbf16, #tpu.memory_space<vmem>>, %arg5: memref<1x256xf32, #tpu.memory_space<vmem>>, %arg6: memref<256x256xbf16, #tpu.memory_space<vmem>>, %arg7: memref<1x256xf32, #tpu.memory_space<vmem>>, %arg8: memref<256x256xbf16, #tpu.memory_space<vmem>>, %arg9: memref<1x256xf32, #tpu.memory_space<vmem>>, %arg10: memref<256x128xbf16, #tpu.memory_space<vmem>>, %arg11: memref<1x128xf32, #tpu.memory_space<vmem>>, %arg12: memref<16x128xf32, #tpu.memory_space<vmem>>) attributes {dimension_semantics = [#tpu.dimension_semantics<parallel>], iteration_bounds = array<i64: 1>, scalar_prefetch = 0 : i64, scratch_operands = 0 : i64, tpu.core_type = #tpu.core_type<tc>, window_params = [{transform_indices = @transform_0, window_bounds = array<i64: 16, 16>}, {pipeline_mode = #tpu.pipeline_mode<synchronous>, transform_indices = @transform_1, window_bounds = array<i64: 16, 256>}, {pipeline_mode = #tpu.pipeline_mode<synchronous>, transform_indices = @transform_2, window_bounds = array<i64: 1, 256>}, {pipeline_mode = #tpu.pipeline_mode<synchronous>, transform_indices = @transform_3, window_bounds = array<i64: 256, 256>}, {pipeline_mode = #tpu.pipeline_mode<synchronous>, transform_indices = @transform_4, window_bounds = array<i64: 1, 256>}, {pipeline_mode = #tpu.pipeline_mode<synchronous>, transform_indices = @transform_5, window_bounds = array<i64: 256, 256>}, {pipeline_mode = #tpu.pipeline_mode<synchronous>, transform_indices = @transform_6, window_bounds = array<i64: 1, 256>}, {pipeline_mode = #tpu.pipeline_mode<synchronous>, transform_indices = @transform_7, window_bounds = array<i64: 256, 256>}, {pipeline_mode = #tpu.pipeline_mode<synchronous>, transform_indices = @transform_8, window_bounds = array<i64: 1, 256>}, {pipeline_mode = #tpu.pipeline_mode<synchronous>, transform_indices = @transform_9, window_bounds = array<i64: 256, 128>}, {pipeline_mode = #tpu.pipeline_mode<synchronous>, transform_indices = @transform_10, window_bounds = array<i64: 1, 128>}, {transform_indices = @transform_11, window_bounds = array<i64: 16, 128>}]} {
    %c0 = arith.constant 0 : index
    %c0_0 = arith.constant 0 : index
    %0 = vector.load %arg1[%c0, %c0_0] : memref<16x16xbf16, #tpu.memory_space<vmem>>, vector<16x16xbf16>
    %c0_1 = arith.constant 0 : index
    %c0_2 = arith.constant 0 : index
    %1 = vector.load %arg2[%c0_1, %c0_2] : memref<16x256xbf16, #tpu.memory_space<vmem>>, vector<16x256xbf16>
    %cst = arith.constant dense<0.000000e+00> : vector<16x256xf32>
    %2 = tpu.matmul %0, %1, %cst {dimension_numbers = #tpu.dot_dimension_numbers<[1], [0], [0], [1], [0, 0, 1, 1], [], []>} : vector<16x16xbf16>, vector<16x256xbf16>, vector<16x256xf32> -> vector<16x256xf32>
    %c0_3 = arith.constant 0 : index
    %c0_4 = arith.constant 0 : index
    %3 = vector.load %arg3[%c0_3, %c0_4] : memref<1x256xf32, #tpu.memory_space<vmem>>, vector<1x256xf32>
    %4 = vector.broadcast %3 : vector<1x256xf32> to vector<16x256xf32>
    %5 = arith.addf %2, %4 : vector<16x256xf32>
    %cst_5 = arith.constant 0.000000e+00 : f32
    %6 = vector.broadcast %cst_5 : f32 to vector<16x256xf32>
    %7 = arith.maximumf %5, %6 : vector<16x256xf32>
    %8 = arith.truncf %7 : vector<16x256xf32> to vector<16x256xbf16>
    %c0_6 = arith.constant 0 : index
    %c0_7 = arith.constant 0 : index
    %9 = vector.load %arg4[%c0_6, %c0_7] : memref<256x256xbf16, #tpu.memory_space<vmem>>, vector<256x256xbf16>
    %cst_8 = arith.constant dense<0.000000e+00> : vector<16x256xf32>
    %10 = tpu.matmul %8, %9, %cst_8 {dimension_numbers = #tpu.dot_dimension_numbers<[1], [0], [0], [1], [0, 0, 1, 1], [], []>} : vector<16x256xbf16>, vector<256x256xbf16>, vector<16x256xf32> -> vector<16x256xf32>
    %c0_9 = arith.constant 0 : index
    %c0_10 = arith.constant 0 : index
    %11 = vector.load %arg5[%c0_9, %c0_10] : memref<1x256xf32, #tpu.memory_space<vmem>>, vector<1x256xf32>
    %12 = vector.broadcast %11 : vector<1x256xf32> to vector<16x256xf32>
    %13 = arith.addf %10, %12 : vector<16x256xf32>
    %cst_11 = arith.constant 0.000000e+00 : f32
    %14 = vector.broadcast %cst_11 : f32 to vector<16x256xf32>
    %15 = arith.maximumf %13, %14 : vector<16x256xf32>
    %16 = arith.truncf %15 : vector<16x256xf32> to vector<16x256xbf16>
    %c0_12 = arith.constant 0 : index
    %c0_13 = arith.constant 0 : index
    %17 = vector.load %arg6[%c0_12, %c0_13] : memref<256x256xbf16, #tpu.memory_space<vmem>>, vector<256x256xbf16>
    %cst_14 = arith.constant dense<0.000000e+00> : vector<16x256xf32>
    %18 = tpu.matmul %16, %17, %cst_14 {dimension_numbers = #tpu.dot_dimension_numbers<[1], [0], [0], [1], [0, 0, 1, 1], [], []>} : vector<16x256xbf16>, vector<256x256xbf16>, vector<16x256xf32> -> vector<16x256xf32>
    %c0_15 = arith.constant 0 : index
    %c0_16 = arith.constant 0 : index
    %19 = vector.load %arg7[%c0_15, %c0_16] : memref<1x256xf32, #tpu.memory_space<vmem>>, vector<1x256xf32>
    %20 = vector.broadcast %19 : vector<1x256xf32> to vector<16x256xf32>
    %21 = arith.addf %18, %20 : vector<16x256xf32>
    %cst_17 = arith.constant 0.000000e+00 : f32
    %22 = vector.broadcast %cst_17 : f32 to vector<16x256xf32>
    %23 = arith.maximumf %21, %22 : vector<16x256xf32>
    %24 = arith.truncf %23 : vector<16x256xf32> to vector<16x256xbf16>
    %c0_18 = arith.constant 0 : index
    %c0_19 = arith.constant 0 : index
    %25 = vector.load %arg8[%c0_18, %c0_19] : memref<256x256xbf16, #tpu.memory_space<vmem>>, vector<256x256xbf16>
    %cst_20 = arith.constant dense<0.000000e+00> : vector<16x256xf32>
    %26 = tpu.matmul %24, %25, %cst_20 {dimension_numbers = #tpu.dot_dimension_numbers<[1], [0], [0], [1], [0, 0, 1, 1], [], []>} : vector<16x256xbf16>, vector<256x256xbf16>, vector<16x256xf32> -> vector<16x256xf32>
    %c0_21 = arith.constant 0 : index
    %c0_22 = arith.constant 0 : index
    %27 = vector.load %arg9[%c0_21, %c0_22] : memref<1x256xf32, #tpu.memory_space<vmem>>, vector<1x256xf32>
    %28 = vector.broadcast %27 : vector<1x256xf32> to vector<16x256xf32>
    %29 = arith.addf %26, %28 : vector<16x256xf32>
    %cst_23 = arith.constant 0.000000e+00 : f32
    %30 = vector.broadcast %cst_23 : f32 to vector<16x256xf32>
    %31 = arith.maximumf %29, %30 : vector<16x256xf32>
    %32 = arith.truncf %31 : vector<16x256xf32> to vector<16x256xbf16>
    %c0_24 = arith.constant 0 : index
    %c0_25 = arith.constant 0 : index
    %33 = vector.load %arg10[%c0_24, %c0_25] : memref<256x128xbf16, #tpu.memory_space<vmem>>, vector<256x128xbf16>
    %cst_26 = arith.constant dense<0.000000e+00> : vector<16x128xf32>
    %34 = tpu.matmul %32, %33, %cst_26 {dimension_numbers = #tpu.dot_dimension_numbers<[1], [0], [0], [1], [0, 0, 1, 1], [], []>} : vector<16x256xbf16>, vector<256x128xbf16>, vector<16x128xf32> -> vector<16x128xf32>
    %c0_27 = arith.constant 0 : index
    %c0_28 = arith.constant 0 : index
    %35 = vector.load %arg11[%c0_27, %c0_28] : memref<1x128xf32, #tpu.memory_space<vmem>>, vector<1x128xf32>
    %36 = vector.broadcast %35 : vector<1x128xf32> to vector<16x128xf32>
    %37 = arith.addf %34, %36 : vector<16x128xf32>
    %cst_29 = arith.constant dense<0xFF800000> : vector<16xf32>
    %38 = vector.multi_reduction <maximumf>, %37, %cst_29 [1] : vector<16x128xf32> to vector<16xf32>
    %39 = vector.shape_cast %38 : vector<16xf32> to vector<16x1xf32>
    %40 = vector.broadcast %39 : vector<16x1xf32> to vector<16x128xf32>
    %41 = arith.subf %37, %40 : vector<16x128xf32>
    %42 = math.exp %41 : vector<16x128xf32>
    %cst_30 = arith.constant dense<0.000000e+00> : vector<16xf32>
    %43 = vector.multi_reduction <add>, %42, %cst_30 [1] : vector<16x128xf32> to vector<16xf32>
    %44 = vector.shape_cast %43 : vector<16xf32> to vector<16x1xf32>
    %45 = math.log %44 : vector<16x1xf32>
    %46 = vector.broadcast %45 : vector<16x1xf32> to vector<16x128xf32>
    %47 = arith.subf %41, %46 : vector<16x128xf32>
    %c0_31 = arith.constant 0 : index
    %c0_32 = arith.constant 0 : index
    %48 = vector.load %arg12[%c0_31, %c0_32] : memref<16x128xf32, #tpu.memory_space<vmem>>, vector<16x128xf32>
    tpu.vector_store %arg12[%c0_31, %c0_32], %47 {strides = array<i32>} : memref<16x128xf32, #tpu.memory_space<vmem>>, vector<16x128xf32>,
    return
  }
  func.func @transform_0(%arg0: i32) -> (i32, i32) {
    %c0_i32 = arith.constant 0 : i32
    %c0_i32_0 = arith.constant 0 : i32
    return %arg0, %c0_i32 : i32, i32
  }
  func.func @transform_1(%arg0: i32) -> (i32, i32) {
    %c0_i32 = arith.constant 0 : i32
    %c0_i32_0 = arith.constant 0 : i32
    %c0_i32_1 = arith.constant 0 : i32
    return %c0_i32, %c0_i32_0 : i32, i32
  }
  func.func @transform_2(%arg0: i32) -> (i32, i32) {
    %c0_i32 = arith.constant 0 : i32
    %c0_i32_0 = arith.constant 0 : i32
    %c0_i32_1 = arith.constant 0 : i32
    return %c0_i32, %c0_i32_0 : i32, i32
  }
  func.func @transform_3(%arg0: i32) -> (i32, i32) {
    %c0_i32 = arith.constant 0 : i32
    %c0_i32_0 = arith.constant 0 : i32
    %c0_i32_1 = arith.constant 0 : i32
    return %c0_i32, %c0_i32_0 : i32, i32
  }
  func.func @transform_4(%arg0: i32) -> (i32, i32) {
    %c0_i32 = arith.constant 0 : i32
    %c0_i32_0 = arith.constant 0 : i32
    %c0_i32_1 = arith.constant 0 : i32
    return %c0_i32, %c0_i32_0 : i32, i32
  }
  func.func @transform_5(%arg0: i32) -> (i32, i32) {
    %c0_i32 = arith.constant 0 : i32
    %c0_i32_0 = arith.constant 0 : i32
    %c0_i32_1 = arith.constant 0 : i32
    return %c0_i32, %c0_i32_0 : i32, i32
  }
  func.func @transform_6(%arg0: i32) -> (i32, i32) {
    %c0_i32 = arith.constant 0 : i32
    %c0_i32_0 = arith.constant 0 : i32
    %c0_i32_1 = arith.constant 0 : i32
    return %c0_i32, %c0_i32_0 : i32, i32
  }
  func.func @transform_7(%arg0: i32) -> (i32, i32) {
    %c0_i32 = arith.constant 0 : i32
    %c0_i32_0 = arith.constant 0 : i32
    %c0_i32_1 = arith.constant 0 : i32
    return %c0_i32, %c0_i32_0 : i32, i32
  }
  func.func @transform_8(%arg0: i32) -> (i32, i32) {
    %c0_i32 = arith.constant 0 : i32
    %c0_i32_0 = arith.constant 0 : i32
    %c0_i32_1 = arith.constant 0 : i32
    return %c0_i32, %c0_i32_0 : i32, i32
  }
  func.func @transform_9(%arg0: i32) -> (i32, i32) {
    %c0_i32 = arith.constant 0 : i32
    %c0_i32_0 = arith.constant 0 : i32
    %c0_i32_1 = arith.constant 0 : i32
    return %c0_i32, %c0_i32_0 : i32, i32
  }
  func.func @transform_10(%arg0: i32) -> (i32, i32) {
    %c0_i32 = arith.constant 0 : i32
    %c0_i32_0 = arith.constant 0 : i32
    %c0_i32_1 = arith.constant 0 : i32
    return %c0_i32, %c0_i32_0 : i32, i32
  }
  func.func @transform_11(%arg0: i32) -> (i32, i32) {
    %c0_i32 = arith.constant 0 : i32
    %c0_i32_0 = arith.constant 0 : i32
    return %arg0, %c0_i32 : i32, i32
  }
}

module attributes {stable_mosaic.version = 11 : i64} {
  func.func @plasticc_kernel(%arg0: i32, %arg1: memref<16x16xbf16, #tpu.memory_space<vmem>>, %arg2: memref<16x256xbf16, #tpu.memory_space<vmem>>, %arg3: memref<1x256xf32, #tpu.memory_space<vmem>>, %arg4: memref<256x256xbf16, #tpu.memory_space<vmem>>, %arg5: memref<1x256xf32, #tpu.memory_space<vmem>>, %arg6: memref<256x256xbf16, #tpu.memory_space<vmem>>, %arg7: memref<1x256xf32, #tpu.memory_space<vmem>>, %arg8: memref<256x256xbf16, #tpu.memory_space<vmem>>, %arg9: memref<1x256xf32, #tpu.memory_space<vmem>>, %arg10: memref<256x128xbf16, #tpu.memory_space<vmem>>, %arg11: memref<1x128xf32, #tpu.memory_space<vmem>>, %arg12: memref<16x128xf32, #tpu.memory_space<vmem>>) attributes {dimension_semantics = [#tpu.dimension_semantics<parallel>], iteration_bounds = array<i64: 1>, scalar_prefetch = 0 : i64, scratch_operands = 0 : i64, tpu.core_type = #tpu.core_type<tc>, window_params = [{transform_indices = @transform_0, window_bounds = array<i64: 16, 16>}, {pipeline_mode = #tpu.pipeline_mode<synchronous>, transform_indices = @transform_1, window_bounds = array<i64: 16, 256>}, {pipeline_mode = #tpu.pipeline_mode<synchronous>, transform_indices = @transform_2, window_bounds = array<i64: 1, 256>}, {pipeline_mode = #tpu.pipeline_mode<synchronous>, transform_indices = @transform_3, window_bounds = array<i64: 256, 256>}, {pipeline_mode = #tpu.pipeline_mode<synchronous>, transform_indices = @transform_4, window_bounds = array<i64: 1, 256>}, {pipeline_mode = #tpu.pipeline_mode<synchronous>, transform_indices = @transform_5, window_bounds = array<i64: 256, 256>}, {pipeline_mode = #tpu.pipeline_mode<synchronous>, transform_indices = @transform_6, window_bounds = array<i64: 1, 256>}, {pipeline_mode = #tpu.pipeline_mode<synchronous>, transform_indices = @transform_7, window_bounds = array<i64: 256, 256>}, {pipeline_mode = #tpu.pipeline_mode<synchronous>, transform_indices = @transform_8, window_bounds = array<i64: 1, 256>}, {pipeline_mode = #tpu.pipeline_mode<synchronous>, transform_indices = @transform_9, window_bounds = array<i64: 256, 128>}, {pipeline_mode = #tpu.pipeline_mode<synchronous>, transform_indices = @transform_10, window_bounds = array<i64: 1, 128>}, {transform_indices = @transform_11, window_bounds = array<i64: 16, 128>}]} {
    %c0 = arith.constant 0 : index
    %c0_0 = arith.constant 0 : index
    %0 = vector.load %arg1[%c0, %c0_0] : memref<16x16xbf16, #tpu.memory_space<vmem>>, vector<16x16xbf16>
    %c0_1 = arith.constant 0 : index
    %c0_2 = arith.constant 0 : index
    %1 = vector.load %arg2[%c0_1, %c0_2] : memref<16x256xbf16, #tpu.memory_space<vmem>>, vector<16x256xbf16>
    %cst = arith.constant dense<0.000000e+00> : vector<16x256xf32>
    %2 = tpu.matmul %0, %1, %cst {dimension_numbers = #tpu.dot_dimension_numbers<[1], [0], [0], [1], [0, 0, 1, 1], [], []>} : vector<16x16xbf16>, vector<16x256xbf16>, vector<16x256xf32> -> vector<16x256xf32>
    %c0_3 = arith.constant 0 : index
    %c0_4 = arith.constant 0 : index
    %3 = vector.load %arg3[%c0_3, %c0_4] : memref<1x256xf32, #tpu.memory_space<vmem>>, vector<1x256xf32>
    %4 = vector.broadcast %3 : vector<1x256xf32> to vector<16x256xf32>
    %5 = arith.addf %2, %4 : vector<16x256xf32>
    %cst_5 = arith.constant 0.000000e+00 : f32
    %6 = vector.broadcast %cst_5 : f32 to vector<16x256xf32>
    %7 = arith.maximumf %5, %6 : vector<16x256xf32>
    %8 = arith.truncf %7 : vector<16x256xf32> to vector<16x256xbf16>
    %c0_6 = arith.constant 0 : index
    %c0_7 = arith.constant 0 : index
    %9 = vector.load %arg4[%c0_6, %c0_7] : memref<256x256xbf16, #tpu.memory_space<vmem>>, vector<256x256xbf16>
    %cst_8 = arith.constant dense<0.000000e+00> : vector<16x256xf32>
    %10 = tpu.matmul %8, %9, %cst_8 {dimension_numbers = #tpu.dot_dimension_numbers<[1], [0], [0], [1], [0, 0, 1, 1], [], []>} : vector<16x256xbf16>, vector<256x256xbf16>, vector<16x256xf32> -> vector<16x256xf32>
    %c0_9 = arith.constant 0 : index
    %c0_10 = arith.constant 0 : index
    %11 = vector.load %arg5[%c0_9, %c0_10] : memref<1x256xf32, #tpu.memory_space<vmem>>, vector<1x256xf32>
    %12 = vector.broadcast %11 : vector<1x256xf32> to vector<16x256xf32>
    %13 = arith.addf %10, %12 : vector<16x256xf32>
    %cst_11 = arith.constant 0.000000e+00 : f32
    %14 = vector.broadcast %cst_11 : f32 to vector<16x256xf32>
    %15 = arith.maximumf %13, %14 : vector<16x256xf32>
    %16 = arith.truncf %15 : vector<16x256xf32> to vector<16x256xbf16>
    %c0_12 = arith.constant 0 : index
    %c0_13 = arith.constant 0 : index
    %17 = vector.load %arg6[%c0_12, %c0_13] : memref<256x256xbf16, #tpu.memory_space<vmem>>, vector<256x256xbf16>
    %cst_14 = arith.constant dense<0.000000e+00> : vector<16x256xf32>
    %18 = tpu.matmul %16, %17, %cst_14 {dimension_numbers = #tpu.dot_dimension_numbers<[1], [0], [0], [1], [0, 0, 1, 1], [], []>} : vector<16x256xbf16>, vector<256x256xbf16>, vector<16x256xf32> -> vector<16x256xf32>
    %c0_15 = arith.constant 0 : index
    %c0_16 = arith.constant 0 : index
    %19 = vector.load %arg7[%c0_15, %c0_16] : memref<1x256xf32, #tpu.memory_space<vmem>>, vector<1x256xf32>
    %20 = vector.broadcast %19 : vector<1x256xf32> to vector<16x256xf32>
    %21 = arith.addf %18, %20 : vector<16x256xf32>
    %cst_17 = arith.constant 0.000000e+00 : f32
    %22 = vector.broadcast %cst_17 : f32 to vector<16x256xf32>
    %23 = arith.maximumf %21, %22 : vector<16x256xf32>
    %24 = arith.truncf %23 : vector<16x256xf32> to vector<16x256xbf16>
    %c0_18 = arith.constant 0 : index
    %c0_19 = arith.constant 0 : index
    %25 = vector.load %arg8[%c0_18, %c0_19] : memref<256x256xbf16, #tpu.memory_space<vmem>>, vector<256x256xbf16>
    %cst_20 = arith.constant dense<0.000000e+00> : vector<16x256xf32>
    %26 = tpu.matmul %24, %25, %cst_20 {dimension_numbers = #tpu.dot_dimension_numbers<[1], [0], [0], [1], [0, 0, 1, 1], [], []>} : vector<16x256xbf16>, vector<256x256xbf16>, vector<16x256xf32> -> vector<16x256xf32>
    %c0_21 = arith.constant 0 : index
    %c0_22 = arith.constant 0 : index
    %27 = vector.load %arg9[%c0_21, %c0_22] : memref<1x256xf32, #tpu.memory_space<vmem>>, vector<1x256xf32>
    %28 = vector.broadcast %27 : vector<1x256xf32> to vector<16x256xf32>
    %29 = arith.addf %26, %28 : vector<16x256xf32>
    %cst_23 = arith.constant 0.000000e+00 : f32
    %30 = vector.broadcast %cst_23 : f32 to vector<16x256xf32>
    %31 = arith.maximumf %29, %30 : vector<16x256xf32>
    %32 = arith.truncf %31 : vector<16x256xf32> to vector<16x256xbf16>
    %c0_24 = arith.constant 0 : index
    %c0_25 = arith.constant 0 : index
    %33 = vector.load %arg10[%c0_24, %c0_25] : memref<256x128xbf16, #tpu.memory_space<vmem>>, vector<256x128xbf16>
    %cst_26 = arith.constant dense<0.000000e+00> : vector<16x128xf32>
    %34 = tpu.matmul %32, %33, %cst_26 {dimension_numbers = #tpu.dot_dimension_numbers<[1], [0], [0], [1], [0, 0, 1, 1], [], []>} : vector<16x256xbf16>, vector<256x128xbf16>, vector<16x128xf32> -> vector<16x128xf32>
    %c0_27 = arith.constant 0 : index
    %c0_28 = arith.constant 0 : index
    %35 = vector.load %arg11[%c0_27, %c0_28] : memref<1x128xf32, #tpu.memory_space<vmem>>, vector<1x128xf32>
    %36 = vector.broadcast %35 : vector<1x128xf32> to vector<16x128xf32>
    %37 = arith.addf %34, %36 : vector<16x128xf32>
    %cst_29 = arith.constant dense<0xFF800000> : vector<16xf32>
    %38 = vector.multi_reduction <maximumf>, %37, %cst_29 [1] : vector<16x128xf32> to vector<16xf32>
    %39 = vector.shape_cast %38 : vector<16xf32> to vector<16x1xf32>
    %40 = vector.broadcast %39 : vector<16x1xf32> to vector<16x128xf32>
    %41 = arith.subf %37, %40 : vector<16x128xf32>
    %42 = math.exp %41 : vector<16x128xf32>
    %cst_30 = arith.constant dense<0.000000e+00> : vector<16xf32>
    %43 = vector.multi_reduction <add>, %42, %cst_30 [1] : vector<16x128xf32> to vector<16xf32>
    %44 = vector.shape_cast %43 : vector<16xf32> to vector<16x1xf32>
    %45 = math.log %44 : vector<16x1xf32>
    %46 = vector.broadcast %45 : vector<16x1xf32> to vector<16x128xf32>
    %47 = arith.subf %41, %46 : vector<16x128xf32>
    %c0_31 = arith.constant 0 : index
    %c0_32 = arith.constant 0 : index
    %48 = vector.load %arg12[%c0_31, %c0_32] : memref<16x128xf32, #tpu.memory_space<vmem>>, vector<16x128xf32>
    tpu.vector_store %arg12[%c0_31, %c0_32], %47 {strides = array<i32>} : memref<16x128xf32, #tpu.memory_space<vmem>>, vector<16x128xf32>,
    return
  }
  func.func @transform_0(%arg0: i32) -> (i32, i32) {
    %c0_i32 = arith.constant 0 : i32
    %c0_i32_0 = arith.constant 0 : i32
    return %arg0, %c0_i32 : i32, i32
  }
  func.func @transform_1(%arg0: i32) -> (i32, i32) {
    %c0_i32 = arith.constant 0 : i32
    %c0_i32_0 = arith.constant 0 : i32
    %c0_i32_1 = arith.constant 0 : i32
    return %c0_i32, %c0_i32_0 : i32, i32
  }
  func.func @transform_2(%arg0: i32) -> (i32, i32) {
    %c0_i32 = arith.constant 0 : i32
    %c0_i32_0 = arith.constant 0 : i32
    %c0_i32_1 = arith.constant 0 : i32
    return %c0_i32, %c0_i32_0 : i32, i32
  }
  func.func @transform_3(%arg0: i32) -> (i32, i32) {
    %c0_i32 = arith.constant 0 : i32
    %c0_i32_0 = arith.constant 0 : i32
    %c0_i32_1 = arith.constant 0 : i32
    return %c0_i32, %c0_i32_0 : i32, i32
  }
  func.func @transform_4(%arg0: i32) -> (i32, i32) {
    %c0_i32 = arith.constant 0 : i32
    %c0_i32_0 = arith.constant 0 : i32
    %c0_i32_1 = arith.constant 0 : i32
    return %c0_i32, %c0_i32_0 : i32, i32
  }
  func.func @transform_5(%arg0: i32) -> (i32, i32) {
    %c0_i32 = arith.constant 0 : i32
    %c0_i32_0 = arith.constant 0 : i32
    %c0_i32_1 = arith.constant 0 : i32
    return %c0_i32, %c0_i32_0 : i32, i32
  }
  func.func @transform_6(%arg0: i32) -> (i32, i32) {
    %c0_i32 = arith.constant 0 : i32
    %c0_i32_0 = arith.constant 0 : i32
    %c0_i32_1 = arith.constant 0 : i32
    return %c0_i32, %c0_i32_0 : i32, i32
  }
  func.func @transform_7(%arg0: i32) -> (i32, i32) {
    %c0_i32 = arith.constant 0 : i32
    %c0_i32_0 = arith.constant 0 : i32
    %c0_i32_1 = arith.constant 0 : i32
    return %c0_i32, %c0_i32_0 : i32, i32
  }
  func.func @transform_8(%arg0: i32) -> (i32, i32) {
    %c0_i32 = arith.constant 0 : i32
    %c0_i32_0 = arith.constant 0 : i32
    %c0_i32_1 = arith.constant 0 : i32
    return %c0_i32, %c0_i32_0 : i32, i32
  }
  func.func @transform_9(%arg0: i32) -> (i32, i32) {
    %c0_i32 = arith.constant 0 : i32
    %c0_i32_0 = arith.constant 0 : i32
    %c0_i32_1 = arith.constant 0 : i32
    return %c0_i32, %c0_i32_0 : i32, i32
  }
  func.func @transform_10(%arg0: i32) -> (i32, i32) {
    %c0_i32 = arith.constant 0 : i32
    %c0_i32_0 = arith.constant 0 : i32
    %c0_i32_1 = arith.constant 0 : i32
    return %c0_i32, %c0_i32_0 : i32, i32
  }
  func.func @transform_11(%arg0: i32) -> (i32, i32) {
    %c0_i32 = arith.constant 0 : i32
    %c0_i32_0 = arith.constant 0 : i32
    return %arg0, %c0_i32 : i32, i32
  }
}

</mosaic_0001>

<bundles_post_ra>
// kernel: tpu_custom_call.1
= control target key start
LH: loop header
LB: loop body
LE: loop exit
PB: predicated region body
PF: predicated region fallthrough
CT: control target
= control target key end

     0   :  { %16 = vsyncpa [#allocation3], 0  ;;  %s1797_s0 = inlined_call_operand.hbm [shape: bf16[16,16], index: 0, kind: input, shape index: {}]   ;;  %s1798_s1 = inlined_call_operand.hbm [shape: bf16[16,256], index: 1, kind: input, shape index: {}]   ;;  %s1799_s2 = inlined_call_operand.vmem [shape: f32[1,256], index: 2, kind: input, shape index: {}]   ;;  %s1800_s3 = inlined_call_operand.hbm [shape: bf16[256,256], index: 3, kind: input, shape index: {}]   ;;  %s1801_s4 = inlined_call_operand.vmem [shape: f32[1,256], index: 4, kind: input, shape index: {}]   ;;  %s1802_s5 = inlined_call_operand.hbm [shape: bf16[256,256], index: 5, kind: input, shape index: {}]   ;;  %s1803_s6 = inlined_call_operand.vmem [shape: f32[1,256], index: 6, kind: input, shape index: {}]   ;;  %s1804_s7 = inlined_call_operand.hbm [shape: bf16[256,256], index: 7, kind: input, shape index: {}]   ;;  %s1805_s8 = inlined_call_operand.vmem [shape: f32[1,256], index: 8, kind: input, shape index: {}]   ;;  %s1806_s9 = inlined_call_operand.hbm [shape: bf16[256,128], index: 9, kind: input, shape index: {}]   ;;  %s1807_s10 = inlined_call_operand.vmem [shape: f32[1,128], index: 10, kind: input, shape index: {}]   ;;  %s1808_s11 = inlined_call_operand.hbm [shape: f32[16,128], index: 11, kind: output, shape index: {}]  }
   0x1   :  { %17 = vsyncpa [#allocation6], 0 }
   0x2   :  { %18 = vsyncpa [#allocation9], 0 }
   0x3   :  { %19 = vsyncpa [#allocation12], 0 }
   0x4   :  { %20 = vsyncpa [#allocation4], 0  ;;  %s1656_s17 = smov [#allocation5]  }
   0x5   :  { %s38_s18 = sshll.u32 %s1656_s17, 4  ;;  %s39_s18 = int_to_ptr.vmem [resolvable:$true] %s38_s18 }
   0x6   :  { %s1514_s19 = scalar_lea.vmem %s39_s18, 256  ;;  %p1519_p1 = scmp.lt.s32.totalorder %s39_s18, %s39_s18 }
   0x7   :  { %p1515_p0 = scmp.ne.s32.totalorder %s39_s18, %s1514_s19  ;;  %p1520_p2 = scmp.lt.s32.totalorder %s1514_s19, %s1514_s19 }
   0x9   :  { %p1521_p3 = por %p1520_p2, %p1519_p1 }
   0xb   :  { %p1522_p4 = pnand %p1521_p3, %p1515_p0 }
   0xd   :  { %1525 = shalt.err (!%p1522_p4)
}
   0xe   :  { %s1657_s20 = smov 128   ;;  %s1658_s21 = smov 8  }
   0xf   :  { %44 = dma.hbm_to_vmem [thread:$0]  %s1798_s1, 256, %s39_s18, [#allocation6], %s1657_s20, %s1657_s20, %s1658_s21  }
  0x10   :  { %s1659_s24 = smov [#allocation8]   ;;  %s1660_s26 = smov [#allocation2]  }
  0x11   :  { %s66_s25 = sshll.u32 %s1659_s24, 4  ;;  %s26_s27 = sshll.u32 %s1660_s26, 4  ;;  %s67_s25 = int_to_ptr.vmem [resolvable:$true] %s66_s25  ;;  %s27_s27 = int_to_ptr.vmem [resolvable:$true] %s26_s27 }
  0x12   :  { %s1534_s28 = scalar_lea.vmem %s67_s25, 4096  ;;  %p1539_p6 = scmp.lt.s32.totalorder %s67_s25, %s67_s25 }
  0x13   :  { %p1535_p5 = scmp.ne.s32.totalorder %s67_s25, %s1534_s28  ;;  %p1540_p7 = scmp.lt.s32.totalorder %s1534_s28, %s1534_s28 }
  0x15   :  { %p1541_p8 = por %p1540_p7, %p1539_p6 }
  0x17   :  { %p1542_p9 = pnand %p1541_p8, %p1535_p5 }
  0x19   :  { %1545 = shalt.err (!%p1542_p9)
}
  0x1a   :  { %72 = dma.hbm_to_vmem [thread:$0]  %s1802_s5, 4096, %s67_s25, [#allocation9], %s1657_s20, %s1657_s20, %s1658_s21  }
  0x1b   :  { %s1554_s1 = scalar_lea.vmem %s27_s27, 128  ;;  %p1559_p11 = scmp.lt.s32.totalorder %s27_s27, %s27_s27 }
  0x1c   :  { %p1555_p10 = scmp.ne.s32.totalorder %s27_s27, %s1554_s1  ;;  %p1560_p12 = scmp.lt.s32.totalorder %s1554_s1, %s1554_s1 }
  0x1e   :  { %p1561_p13 = por %p1560_p12, %p1559_p11 }
  0x20   :  { %p1562_p0 = pnand %p1561_p13, %p1555_p10 }
  0x22   :  { %1565 = shalt.err (!%p1562_p0)
}
  0x23   :  { %s1661_s12 = smov 64   ;;  %s1662_s13 = smov 4  }
  0x24   :  { %32 = dma.hbm_to_vmem [thread:$0]  %s1797_s0, 128, %s27_s27, [#allocation3], %s1661_s12, %s1661_s12, %s1662_s13  }
  0x25   :  { %s1663_s16 = smov [#allocation7]   ;;  %s1664_s5 = smov [#allocation10]  }
  0x26   :  { %s52_s17 = sshll.u32 %s1663_s16, 4  ;;  %s80_s18 = sshll.u32 %s1664_s5, 4  ;;  %s53_s17 = int_to_ptr.vmem [resolvable:$true] %s52_s17  ;;  %s81_s18 = int_to_ptr.vmem [resolvable:$true] %s80_s18 }
  0x27   :  { %s1574_s19 = scalar_lea.vmem %s53_s17, 4096  ;;  %p1579_p2 = scmp.lt.s32.totalorder %s53_s17, %s53_s17 }
  0x28   :  { %p1575_p1 = scmp.ne.s32.totalorder %s53_s17, %s1574_s19  ;;  %p1580_p3 = scmp.lt.s32.totalorder %s1574_s19, %s1574_s19 }
  0x2a   :  { %p1581_p4 = por %p1580_p3, %p1579_p2 }
  0x2c   :  { %p1582_p5 = pnand %p1581_p4, %p1575_p1 }
  0x2e   :  { %1585 = shalt.err (!%p1582_p5)
}
  0x2f   :  { %58 = dma.hbm_to_vmem [thread:$0]  %s1800_s3, 4096, %s53_s17, [#allocation6], %s1657_s20, %s1657_s20, %s1658_s21  }
  0x30   :  { %s1594_s0 = scalar_lea.vmem %s81_s18, 4096  ;;  %p1599_p7 = scmp.lt.s32.totalorder %s81_s18, %s81_s18 }
  0x31   :  { %p1595_p6 = scmp.ne.s32.totalorder %s81_s18, %s1594_s0  ;;  %p1600_p8 = scmp.lt.s32.totalorder %s1594_s0, %s1594_s0 }
  0x33   :  { %p1601_p9 = por %p1600_p8, %p1599_p7 }
  0x35   :  { %p1602_p10 = pnand %p1601_p9, %p1595_p6 }
  0x37   :  { %1605 = shalt.err (!%p1602_p10)
}
  0x38   :  { %86 = dma.hbm_to_vmem [thread:$0]  %s1804_s7, 4096, %s81_s18, [#allocation9], %s1657_s20, %s1657_s20, %s1658_s21  }
  0x39   :  { %s1665_s26 = smov [#allocation11]  }
  0x3a   :  { %s94_s27 = sshll.u32 %s1665_s26, 4  ;;  %s95_s27 = int_to_ptr.vmem [resolvable:$true] %s94_s27 }
  0x3b   :  { %s1614_s28 = scalar_lea.vmem %s95_s27, 2048  ;;  %p1619_p12 = scmp.lt.s32.totalorder %s95_s27, %s95_s27 }
  0x3c   :  { %p1615_p11 = scmp.ne.s32.totalorder %s95_s27, %s1614_s28  ;;  %p1620_p13 = scmp.lt.s32.totalorder %s1614_s28, %s1614_s28 }
  0x3e   :  { %p1621_p0 = por %p1620_p13, %p1619_p12 }
  0x40   :  { %p1622_p1 = pnand %p1621_p0, %p1615_p11 }
  0x42   :  { %1625 = shalt.err (!%p1622_p1)
}
  0x43   :  { %100 = dma.hbm_to_vmem [thread:$0]  %s1806_s9, 2048, %s95_s27, [#allocation12], %s1661_s12, %s1661_s12, %s1662_s13  }
  0x44   :  { %1646 = dma.done.wait [#allocation3], 128  }
  0x45   :  { %1647 = vsyncadd [#allocation3], 4294967168 }
  0x46   :  { %1648 = dma.done.wait [#allocation6], 4352  }
  0x47   :  { %1649 = vsyncadd [#allocation6], 4294962944 }
  0x48   :  { %1650 = dma.done.wait [#allocation9], 8192  }
  0x49   :  { %1651 = vsyncadd [#allocation9], 4294959104 }
  0x4a   :  { %1652 = dma.done.wait [#allocation12], 2048  }
  0x4b   :  { %1653 = vsyncadd [#allocation12], 4294965248  ;;  %v1666_v0 = vmov 0   ;;  %v1334_v1 = vld [vmem:[#allocation5 + $0x4] ss:$8 sps:$4 sm:$0xff]   ;;  %v1337_v3 = vld [vmem:[#allocation2] sm:$0xff]   ;;  %v128_v62 = vlaneseq }
  0x4c   :  { %189 = vmatprep.mubr.bf16.mxu0 %v1666_v0  ;;  %v1336_v2 = vld [vmem:[#allocation5] ss:$8 sps:$4 sm:$0xff]   ;;  %171 = vmatprep.subr.bf16.mxu0 %v1334_v1  ;;  %vm153_vm0 = vcmask 130048   ;;  %v1338_v4 = vld [vmem:[#allocation7 + $0x74] ss:$8 sps:$4 sm:$0xff]  }
  0x4d   :  { %172 = vmatpush1.bf16.msra.mxu0 %v1336_v2  ;;  %v1340_v5 = vld [vmem:[#allocation7 + $0x70] ss:$8 sps:$4 sm:$0xff]   ;;  %v1341_v6 = vld [vmem:[#allocation7 + $0x64] ss:$8 sps:$4 sm:$0xff]   ;;  %410 = vmatprep.subr.bf16.mxu1 %v1338_v4  ;;  %v1343_v7 = vld [vmem:[#allocation7 + $0x60] ss:$8 sps:$4 sm:$0xff]  }
  0x4e   :  { %411 = vmatpush1.bf16.msra.mxu1 %v1340_v5  ;;  %v1344_v8 = vld [vmem:[#allocation7 + $0x54] ss:$8 sps:$4 sm:$0xff]   ;;  %v1346_v9 = vld [vmem:[#allocation7 + $0x50] ss:$8 sps:$4 sm:$0xff]   ;;  %v1347_v10 = vld [vmem:[#allocation7 + $0x44] ss:$8 sps:$4 sm:$0xff]  }
  0x4f   :  { %412 = vmatprep.subr.bf16.mxu1 %v1341_v6  ;;  %v1349_v11 = vld [vmem:[#allocation7 + $0x40] ss:$8 sps:$4 sm:$0xff]   ;;  %v1350_v12 = vld [vmem:[#allocation7 + $0x34] ss:$8 sps:$4 sm:$0xff]   ;;  %v1352_v13 = vld [vmem:[#allocation7 + $0x30] ss:$8 sps:$4 sm:$0xff]  }
  0x50   :  { %1186 = vmatmul.mubr.msk.bf16.vlgmr.msra.gmra.mxu0 %vm153_vm0, %v1337_v3  ;;  %v1353_v14 = vld [vmem:[#allocation7 + $0x24] ss:$8 sps:$4 sm:$0xff]   ;;  %v1355_v15 = vld [vmem:[#allocation7 + $0x20] ss:$8 sps:$4 sm:$0xff]   ;;  %v1356_v16 = vld [vmem:[#allocation7 + $0x14] ss:$8 sps:$4 sm:$0xff]  }
  0x51   :  { %v1358_v17 = vld [vmem:[#allocation7 + $0x10] ss:$8 sps:$4 sm:$0xff]   ;;  %v1359_v18 = vld [vmem:[#allocation7 + $0x4] ss:$8 sps:$4 sm:$0xff]   ;;  %v1361_v19 = vld [vmem:[#allocation7] ss:$8 sps:$4 sm:$0xff]  }
  0x52   :  { %413 = vmatpush1.bf16.msra.mxu1 %v1343_v7  ;;  %v1362_v20 = vld [vmem:[#allocation7 + $0xf4] ss:$8 sps:$4 sm:$0xff]   ;;  %v1364_v21 = vld [vmem:[#allocation7 + $0xf0] ss:$8 sps:$4 sm:$0xff]   ;;  %v1365_v22 = vld [vmem:[#allocation7 + $0xe4] ss:$8 sps:$4 sm:$0xff]  }
  0x53   :  { %414 = vmatprep.subr.bf16.mxu1 %v1344_v8  ;;  %v1367_v23 = vld [vmem:[#allocation7 + $0xe0] ss:$8 sps:$4 sm:$0xff]   ;;  %v1368_v24 = vld [vmem:[#allocation7 + $0xd4] ss:$8 sps:$4 sm:$0xff]   ;;  %v1370_v25 = vld [vmem:[#allocation7 + $0xd0] ss:$8 sps:$4 sm:$0xff]  }
  0x54   :  { %v1371_v26 = vld [vmem:[#allocation7 + $0xc4] ss:$8 sps:$4 sm:$0xff]   ;;  %v1373_v27 = vld [vmem:[#allocation7 + $0xc0] ss:$8 sps:$4 sm:$0xff]   ;;  %v1374_v28 = vld [vmem:[#allocation7 + $0xb4] ss:$8 sps:$4 sm:$0xff]  }
  0x55   :  { %v1376_v29 = vld [vmem:[#allocation7 + $0xb0] ss:$8 sps:$4 sm:$0xff]   ;;  %v1377_v30 = vld [vmem:[#allocation7 + $0xa4] ss:$8 sps:$4 sm:$0xff]   ;;  %v1379_v31 = vld [vmem:[#allocation7 + $0xa0] ss:$8 sps:$4 sm:$0xff]  }
  0x56   :  { %415 = vmatpush1.bf16.msra.mxu1 %v1346_v9  ;;  %v1380_v32 = vld [vmem:[#allocation7 + $0x94] ss:$8 sps:$4 sm:$0xff]   ;;  %v1382_v33 = vld [vmem:[#allocation7 + $0x90] ss:$8 sps:$4 sm:$0xff]   ;;  %v1383_v34 = vld [vmem:[#allocation7 + $0x84] ss:$8 sps:$4 sm:$0xff]  }
  0x57   :  { %416 = vmatprep.subr.bf16.mxu1 %v1347_v10  ;;  %v1385_v35 = vld [vmem:[#allocation7 + $0x80] ss:$8 sps:$4 sm:$0xff]   ;;  %v1386_v36 = vld [vmem:[#allocation8 + $0x70] ss:$8 sps:$4 sm:$0xff]   ;;  %v1388_v37 = vld [vmem:[#allocation8 + $0x74] ss:$8 sps:$4 sm:$0xff]  }
  0x58   :  { %v1391_v38 = vld [vmem:[#allocation8 + $0x64] ss:$8 sps:$4 sm:$0xff]   ;;  %663 = vmatprep.subr.bf16.mxu0 %v1388_v37  ;;  %v1389_v39 = vld [vmem:[#allocation8 + $0x60] ss:$8 sps:$4 sm:$0xff]   ;;  %v1394_v40 = vld [vmem:[#allocation8 + $0x54] ss:$8 sps:$4 sm:$0xff]  }
  0x59   :  { %664 = vmatpush1.bf16.msra.mxu0 %v1386_v36  ;;  %v1392_v41 = vld [vmem:[#allocation8 + $0x50] ss:$8 sps:$4 sm:$0xff]   ;;  %v1397_v42 = vld [vmem:[#allocation8 + $0x44] ss:$8 sps:$4 sm:$0xff]   ;;  %v1395_v43 = vld [vmem:[#allocation8 + $0x40] ss:$8 sps:$4 sm:$0xff]  }
  0x5a   :  { %417 = vmatpush1.bf16.msra.mxu1 %v1349_v11  ;;  %665 = vmatprep.subr.bf16.mxu0 %v1391_v38  ;;  %v1400_v44 = vld [vmem:[#allocation8 + $0x34] ss:$8 sps:$4 sm:$0xff]   ;;  %v1398_v45 = vld [vmem:[#allocation8 + $0x30] ss:$8 sps:$4 sm:$0xff]   ;;  %v1403_v46 = vld [vmem:[#allocation8 + $0x24] ss:$8 sps:$4 sm:$0xff]  }
  0x5b   :  { %418 = vmatprep.subr.bf16.mxu1 %v1350_v12  ;;  %v1401_v47 = vld [vmem:[#allocation8 + $0x20] ss:$8 sps:$4 sm:$0xff]   ;;  %v1406_v48 = vld [vmem:[#allocation8 + $0x14] ss:$8 sps:$4 sm:$0xff]   ;;  %v1404_v49 = vld [vmem:[#allocation8 + $0x10] ss:$8 sps:$4 sm:$0xff]  }
  0x5c   :  { %v1409_v50 = vld [vmem:[#allocation8 + $0x4] ss:$8 sps:$4 sm:$0xff]   ;;  %v1407_v51 = vld [vmem:[#allocation8] ss:$8 sps:$4 sm:$0xff]   ;;  %v1412_v52 = vld [vmem:[#allocation8 + $0xf4] ss:$8 sps:$4 sm:$0xff]  }
  0x5d   :  { %666 = vmatpush1.bf16.msra.mxu0 %v1389_v39  ;;  %v1410_v53 = vld [vmem:[#allocation8 + $0xf0] ss:$8 sps:$4 sm:$0xff]   ;;  %v1415_v54 = vld [vmem:[#allocation8 + $0xe4] ss:$8 sps:$4 sm:$0xff]   ;;  %v1413_v55 = vld [vmem:[#allocation8 + $0xe0] ss:$8 sps:$4 sm:$0xff]  }
  0x5e   :  { %419 = vmatpush1.bf16.msra.mxu1 %v1352_v13  ;;  %667 = vmatprep.subr.bf16.mxu0 %v1394_v40  ;;  %v1418_v56 = vld [vmem:[#allocation8 + $0xd4] ss:$8 sps:$4 sm:$0xff]   ;;  %v1416_v57 = vld [vmem:[#allocation8 + $0xd0] ss:$8 sps:$4 sm:$0xff]   ;;  %v1421_v58 = vld [vmem:[#allocation8 + $0xc4] ss:$8 sps:$4 sm:$0xff]  }
  0x5f   :  { %420 = vmatprep.subr.bf16.mxu1 %v1353_v14  ;;  %v1419_v59 = vld [vmem:[#allocation8 + $0xc0] ss:$8 sps:$4 sm:$0xff]   ;;  %v1424_v60 = vld [vmem:[#allocation8 + $0xb4] ss:$8 sps:$4 sm:$0xff]   ;;  %v1422_v61 = vld [vmem:[#allocation8 + $0xb0] ss:$8 sps:$4 sm:$0xff]  }
  0x60   :  { %v129_v63 = vshrl.u32 %v128_v62, 7  ;;  %v126_v2 = vld [vmem:[%s1799_s2] sm:$0x3]  ;;  %v1454_v37 = vld [vmem:[#allocation10 + $0x14] ss:$8 sps:$4 sm:$0xff]  }
  0x61   :  { %668 = vmatpush1.bf16.msra.mxu0 %v1392_v41  ;;  %v1449_v36 = vld [vmem:[#allocation10 + $0x20] ss:$8 sps:$4 sm:$0xff]   ;;  %v1452_v38 = vld [vmem:[#allocation10 + $0x10] ss:$8 sps:$4 sm:$0xff]   ;;  %v1457_v39 = vld [vmem:[#allocation10 + $0x4] ss:$8 sps:$4 sm:$0xff]  }
  0x62   :  { %421 = vmatpush1.bf16.msra.mxu1 %v1355_v15  ;;  %669 = vmatprep.subr.bf16.mxu0 %v1397_v42  ;;  %v1764_v0 = vsub.s32 1, %v129_v63  ;;  %v1766_v1 = vsub.s32 0, %v129_v63  ;;  %v1455_v40 = vld [vmem:[#allocation10] ss:$8 sps:$4 sm:$0xff]   ;;  %v1460_v41 = vld [vmem:[#allocation10 + $0xf4] ss:$8 sps:$4 sm:$0xff]  }
  0x63   :  { %422 = vmatprep.subr.bf16.mxu1 %v1356_v16  ;;  %v1458_v42 = vld [vmem:[#allocation10 + $0xf0] ss:$8 sps:$4 sm:$0xff]  }
  0x64   :  { %v135_v4 = vrot.slane %v126_v2, %v1764_v0  ;;  %v131_v5 = vrot.slane %v126_v2, %v1766_v1 }
  0x65   :  { %670 = vmatpush1.bf16.msra.mxu0 %v1395_v43  ;;  %v1463_v43 = vld [vmem:[#allocation10 + $0xe4] ss:$8 sps:$4 sm:$0xff]  }
  0x66   :  { %423 = vmatpush1.bf16.msra.mxu1 %v1358_v17  ;;  %671 = vmatprep.subr.bf16.mxu0 %v1400_v44  ;;  %v1461_v44 = vld [vmem:[#allocation10 + $0xe0] ss:$8 sps:$4 sm:$0xff]  }
  0x67   :  { %424 = vmatprep.subr.bf16.mxu1 %v1359_v18 }
  0x69   :  { %672 = vmatpush1.bf16.msra.mxu0 %v1398_v45  ;;  %v1466_v45 = vld [vmem:[#allocation10 + $0xd4] ss:$8 sps:$4 sm:$0xff]  }
  0x6a   :  { %425 = vmatpush1.bf16.msra.mxu1 %v1361_v19  ;;  %673 = vmatprep.subr.bf16.mxu0 %v1403_v46  ;;  %v1427_v19 = vld [vmem:[#allocation8 + $0xa4] ss:$8 sps:$4 sm:$0xff]   ;;  %v1464_v46 = vld [vmem:[#allocation10 + $0xd0] ss:$8 sps:$4 sm:$0xff]  }
  0x6b   :  { %426 = vmatprep.subr.bf16.mxu1 %v1362_v20  ;;  %v1425_v20 = vld [vmem:[#allocation8 + $0xa0] ss:$8 sps:$4 sm:$0xff]  }
  0x6d   :  { %674 = vmatpush1.bf16.msra.mxu0 %v1401_v47  ;;  %v1469_v47 = vld [vmem:[#allocation10 + $0xc4] ss:$8 sps:$4 sm:$0xff]  }
  0x6e   :  { %427 = vmatpush2.bf16.msra.mxu1 %v1364_v21  ;;  %675 = vmatprep.subr.bf16.mxu0 %v1406_v48  ;;  %v1430_v21 = vld [vmem:[#allocation8 + $0x94] ss:$8 sps:$4 sm:$0xff]   ;;  %v1467_v48 = vld [vmem:[#allocation10 + $0xc0] ss:$8 sps:$4 sm:$0xff]  }
  0x6f   :  { %428 = vmatprep.subr.bf16.mxu1 %v1365_v22  ;;  %v1428_v22 = vld [vmem:[#allocation8 + $0x90] ss:$8 sps:$4 sm:$0xff]  }
  0x71   :  { %676 = vmatpush1.bf16.msra.mxu0 %v1404_v49  ;;  %v1472_v49 = vld [vmem:[#allocation10 + $0xb4] ss:$8 sps:$4 sm:$0xff]  }
  0x72   :  { %429 = vmatpush2.bf16.msra.mxu1 %v1367_v23  ;;  %677 = vmatprep.subr.bf16.mxu0 %v1409_v50  ;;  %v1433_v23 = vld [vmem:[#allocation8 + $0x84] ss:$8 sps:$4 sm:$0xff]   ;;  %v1470_v50 = vld [vmem:[#allocation10 + $0xb0] ss:$8 sps:$4 sm:$0xff]  }
  0x73   :  { %430 = vmatprep.subr.bf16.mxu1 %v1368_v24  ;;  %v1431_v24 = vld [vmem:[#allocation8 + $0x80] ss:$8 sps:$4 sm:$0xff]  }
  0x75   :  { %678 = vmatpush1.bf16.msra.mxu0 %v1407_v51  ;;  %v238_v51 = vld [vmem:[%s1801_s4] sm:$0x3] }
  0x76   :  { %431 = vmatpush2.bf16.msra.mxu1 %v1370_v25  ;;  %679 = vmatprep.subr.bf16.mxu0 %v1412_v52  ;;  %v1434_v25 = vld [vmem:[#allocation10 + $0x70] ss:$8 sps:$4 sm:$0xff]  }
  0x77   :  { %432 = vmatprep.subr.bf16.mxu1 %v1371_v26  ;;  %v1436_v26 = vld [vmem:[#allocation10 + $0x74] ss:$8 sps:$4 sm:$0xff]  }
  0x79   :  { %680 = vmatpush2.bf16.msra.mxu0 %v1410_v53  ;;  %v247_v53 = vrot.slane %v238_v51, %v1764_v0 }
  0x7a   :  { %433 = vmatpush2.bf16.msra.mxu1 %v1373_v27  ;;  %681 = vmatprep.subr.bf16.mxu0 %v1415_v54  ;;  %v1439_v27 = vld [vmem:[#allocation10 + $0x64] ss:$8 sps:$4 sm:$0xff]   ;;  %v243_v54 = vrot.slane %v238_v51, %v1766_v1 }
  0x7b   :  { %434 = vmatprep.subr.bf16.mxu1 %v1374_v28  ;;  %v1437_v28 = vld [vmem:[#allocation10 + $0x60] ss:$8 sps:$4 sm:$0xff]  }
  0x7d   :  { %682 = vmatpush2.bf16.msra.mxu0 %v1413_v55 }
  0x7e   :  { %435 = vmatpush2.bf16.msra.mxu1 %v1376_v29  ;;  %683 = vmatprep.subr.bf16.mxu0 %v1418_v56  ;;  %v1442_v29 = vld [vmem:[#allocation10 + $0x54] ss:$8 sps:$4 sm:$0xff]  }
  0x7f   :  { %436 = vmatprep.subr.bf16.mxu1 %v1377_v30  ;;  %v1440_v30 = vld [vmem:[#allocation10 + $0x50] ss:$8 sps:$4 sm:$0xff]  }
  0x81   :  { %684 = vmatpush2.bf16.msra.mxu0 %v1416_v57 }
  0x82   :  { %437 = vmatpush2.bf16.msra.mxu1 %v1379_v31  ;;  %685 = vmatprep.subr.bf16.mxu0 %v1421_v58  ;;  %v1445_v31 = vld [vmem:[#allocation10 + $0x44] ss:$8 sps:$4 sm:$0xff]  }
  0x83   :  { %438 = vmatprep.subr.bf16.mxu1 %v1380_v32  ;;  %v1443_v32 = vld [vmem:[#allocation10 + $0x40] ss:$8 sps:$4 sm:$0xff]  }
  0x85   :  { %686 = vmatpush2.bf16.msra.mxu0 %v1419_v59 }
  0x86   :  { %439 = vmatpush2.bf16.msra.mxu1 %v1382_v33  ;;  %687 = vmatprep.subr.bf16.mxu0 %v1424_v60  ;;  %v1448_v33 = vld [vmem:[#allocation10 + $0x34] ss:$8 sps:$4 sm:$0xff]  }
  0x87   :  { %440 = vmatprep.subr.bf16.mxu1 %v1383_v34  ;;  %v1446_v34 = vld [vmem:[#allocation10 + $0x30] ss:$8 sps:$4 sm:$0xff]  }
  0x89   :  { %688 = vmatpush2.bf16.msra.mxu0 %v1422_v61 }
  0x8a   :  { %441 = vmatpush2.bf16.msra.mxu1 %v1385_v35  ;;  %689 = vmatprep.subr.bf16.mxu0 %v1427_v19  ;;  %v1451_v35 = vld [vmem:[#allocation10 + $0x24] ss:$8 sps:$4 sm:$0xff]  }
  0x8b   :  { %916 = vmatprep.subr.bf16.mxu1 %v1436_v26  ;;  %v1489_v19 = vld [vmem:[#allocation11 + $0x20] sm:$0xff]  }
  0x8d   :  { %690 = vmatpush2.bf16.msra.mxu0 %v1425_v20  ;;  %v1490_v20 = vld [vmem:[#allocation11 + $0x58] sm:$0xff]  }
  0x8e   :  { %691 = vmatprep.subr.bf16.mxu0 %v1430_v21  ;;  %v1491_v21 = vld [vmem:[#allocation11 + $0x18] sm:$0xff]  }
  0x91   :  { %692 = vmatpush2.bf16.msra.mxu0 %v1428_v22  ;;  %v491_v22 = vld [vmem:[%s1803_s6] sm:$0x3] }
  0x92   :  { %693 = vmatprep.subr.bf16.mxu0 %v1433_v23 }
  0x95   :  { %694 = vmatpush2.bf16.msra.mxu0 %v1431_v24  ;;  %v500_v24 = vrot.slane %v491_v22, %v1764_v0 }
 0x110   :  { %v191_v3 = vpop.f32.mrf.mxu0 }
 0x111   :  { %v192_v10 = vadd.f32 %v191_v3, %v131_v5 }
 0x112   :  { %v193_v6 = vpop.f32.mrf.mxu0 }
 0x113   :  { %v194_v8 = vadd.f32 %v193_v6, %v135_v4  ;;  %v200_v16 = vmax.f32 %v192_v10, 0.0  ;;  %v1475_v6 = vld [vmem:[#allocation10 + $0xa4] ss:$8 sps:$4 sm:$0xff]  }
 0x114   :  { %v195_v7 = vpop.f32.mrf.mxu0  ;;  %v1481_v10 = vld [vmem:[#allocation10 + $0x84] ss:$8 sps:$4 sm:$0xff]  }
 0x115   :  { %v196_v9 = vadd.f32 %v195_v7, %v131_v5  ;;  %v201_v14 = vmax.f32 %v194_v8, 0.0  ;;  %v1473_v7 = vld [vmem:[#allocation10 + $0xa0] ss:$8 sps:$4 sm:$0xff]   ;;  %v1478_v8 = vld [vmem:[#allocation10 + $0x94] ss:$8 sps:$4 sm:$0xff]  }
 0x116   :  { %v197_v11 = vpop.f32.mrf.mxu0 }
 0x117   :  { %v198_v12 = vadd.f32 %v197_v11, %v135_v4  ;;  %v202_v13 = vmax.f32 %v196_v9, 0.0  ;;  %v1476_v9 = vld [vmem:[#allocation10 + $0x90] ss:$8 sps:$4 sm:$0xff]   ;;  %v1479_v11 = vld [vmem:[#allocation10 + $0x80] ss:$8 sps:$4 sm:$0xff]  }
 0x119   :  { %v203_v15 = vmax.f32 %v198_v12, 0.0  ;;  %v204_v18 = vpack.c.bf16 %v202_v13, %v200_v16  ;;  %v1482_v12 = vld [vmem:[#allocation11 + $0x78] sm:$0xff]   ;;  %v1486_v16 = vld [vmem:[#allocation11 + $0x68] sm:$0xff]  }
 0x11a   :  { %v1483_v13 = vld [vmem:[#allocation11 + $0x38] sm:$0xff]   ;;  %1300 = vmatprep.subr.bf16.mxu0 %v1482_v12 }
 0x11b   :  { %v205_v17 = vpack.c.bf16 %v203_v15, %v201_v14  ;;  %v1484_v14 = vld [vmem:[#allocation11 + $0x70] sm:$0xff]  }
 0x11c   :  { %v1485_v15 = vld [vmem:[#allocation11 + $0x30] sm:$0xff]  }
 0x11d   :  { %442 = vmatprep.mubr.bf16.mxu1 %v205_v17  ;;  %v1487_v17 = vld [vmem:[#allocation11 + $0x28] sm:$0xff]  }
 0x11e   :  { %443 = vmatmul.mubr.bf16.vlgmr.msra.gmra.mxu1 %v204_v18  ;;  %v1488_v18 = vld [vmem:[#allocation11 + $0x60] sm:$0xff]  }
 0x11f   :  { %917 = vmatpush1.bf16.msra.mxu1 %v1434_v25  ;;  %v496_v25 = vrot.slane %v491_v22, %v1766_v1 }
 0x120   :  { %918 = vmatprep.subr.bf16.mxu1 %v1439_v27 }
 0x123   :  { %919 = vmatpush1.bf16.msra.mxu1 %v1437_v28 }
 0x124   :  { %920 = vmatprep.subr.bf16.mxu1 %v1442_v29 }
 0x127   :  { %921 = vmatpush1.bf16.msra.mxu1 %v1440_v30 }
 0x128   :  { %922 = vmatprep.subr.bf16.mxu1 %v1445_v31 }
 0x12b   :  { %923 = vmatpush1.bf16.msra.mxu1 %v1443_v32 }
 0x12c   :  { %924 = vmatprep.subr.bf16.mxu1 %v1448_v33 }
 0x12f   :  { %925 = vmatpush1.bf16.msra.mxu1 %v1446_v34 }
 0x130   :  { %926 = vmatprep.subr.bf16.mxu1 %v1451_v35 }
 0x133   :  { %927 = vmatpush1.bf16.msra.mxu1 %v1449_v36 }
 0x134   :  { %928 = vmatprep.subr.bf16.mxu1 %v1454_v37 }
 0x137   :  { %929 = vmatpush1.bf16.msra.mxu1 %v1452_v38 }
 0x138   :  { %930 = vmatprep.subr.bf16.mxu1 %v1457_v39  ;;  %v1492_v39 = vld [vmem:[#allocation11 + $0x50] sm:$0xff]  }
 0x13b   :  { %931 = vmatpush1.bf16.msra.mxu1 %v1455_v40  ;;  %v1493_v40 = vld [vmem:[#allocation11 + $0x10] sm:$0xff]  }
 0x13c   :  { %932 = vmatprep.subr.bf16.mxu1 %v1460_v41  ;;  %v1494_v41 = vld [vmem:[#allocation11 + $0x48] sm:$0xff]  }
 0x13f   :  { %933 = vmatpush2.bf16.msra.mxu1 %v1458_v42  ;;  %v1495_v42 = vld [vmem:[#allocation11 + $0x8] sm:$0xff]  }
 0x140   :  { %934 = vmatprep.subr.bf16.mxu1 %v1463_v43  ;;  %v1496_v43 = vld [vmem:[#allocation11 + $0x40] sm:$0xff]  }
 0x143   :  { %935 = vmatpush2.bf16.msra.mxu1 %v1461_v44  ;;  %v1497_v44 = vld [vmem:[#allocation11] sm:$0xff]  }
 0x144   :  { %936 = vmatprep.subr.bf16.mxu1 %v1466_v45  ;;  %v744_v45 = vld [vmem:[%s1805_s8] sm:$0x3] }
 0x147   :  { %937 = vmatpush2.bf16.msra.mxu1 %v1464_v46 }
 0x148   :  { %938 = vmatprep.subr.bf16.mxu1 %v1469_v47  ;;  %v753_v47 = vrot.slane %v744_v45, %v1764_v0  ;;  %v1283_v0 = vld [vmem:[%s1807_s10] ss:$0 sm:$0xff]  ;;  %s1667_s10 = smov [#allocation13]  }
 0x149   :  { %s1168_s14 = sshll.u32 %s1667_s10, 4  ;;  %s1169_s14 = int_to_ptr.vmem [resolvable:$true] %s1168_s14 }
 0x14a   :  { %s1626_s15 = scalar_lea.vmem %s1169_s14, 256  ;;  %p1631_p3 = scmp.lt.s32.totalorder %s1169_s14, %s1169_s14 }
 0x14b   :  { %939 = vmatpush2.bf16.msra.mxu1 %v1467_v48  ;;  %v749_v48 = vrot.slane %v744_v45, %v1766_v1  ;;  %p1627_p2 = scmp.ne.s32.totalorder %s1169_s14, %s1626_s15  ;;  %p1632_p4 = scmp.lt.s32.totalorder %s1626_s15, %s1626_s15 }
 0x14c   :  { %940 = vmatprep.subr.bf16.mxu1 %v1472_v49 }
 0x14d   :  { %p1633_p5 = por %p1632_p4, %p1631_p3 }
 0x14f   :  { %941 = vmatpush2.bf16.msra.mxu1 %v1470_v50  ;;  %p1634_p6 = pnand %p1633_p5, %p1627_p2 }
 0x150   :  { %942 = vmatprep.subr.bf16.mxu1 %v1475_v6 }
 0x153   :  { %943 = vmatpush2.bf16.msra.mxu1 %v1473_v7 }
 0x154   :  { %944 = vmatprep.subr.bf16.mxu1 %v1478_v8 }
 0x157   :  { %945 = vmatpush2.bf16.msra.mxu1 %v1476_v9 }
 0x158   :  { %946 = vmatprep.subr.bf16.mxu1 %v1481_v10 }
 0x15b   :  { %947 = vmatpush2.bf16.msra.mxu1 %v1479_v11 }
 0x1de   :  { %v444_v52 = vpop.f32.mrf.mxu1 }
 0x1df   :  { %v445_v59 = vadd.f32 %v444_v52, %v243_v54 }
 0x1e0   :  { %v446_v55 = vpop.f32.mrf.mxu1 }
 0x1e1   :  { %v447_v57 = vadd.f32 %v446_v55, %v247_v53  ;;  %v453_v3 = vmax.f32 %v445_v59, 0.0 }
 0x1e2   :  { %v448_v56 = vpop.f32.mrf.mxu1 }
 0x1e3   :  { %v449_v58 = vadd.f32 %v448_v56, %v243_v54  ;;  %v454_v63 = vmax.f32 %v447_v57, 0.0 }
 0x1e4   :  { %v450_v60 = vpop.f32.mrf.mxu1 }
 0x1e5   :  { %v451_v61 = vadd.f32 %v450_v60, %v247_v53  ;;  %v455_v62 = vmax.f32 %v449_v58, 0.0 }
 0x1e7   :  { %v456_v2 = vmax.f32 %v451_v61, 0.0  ;;  %v457_v5 = vpack.c.bf16 %v455_v62, %v453_v3 }
 0x1e9   :  { %v458_v4 = vpack.c.bf16 %v456_v2, %v454_v63 }
 0x1eb   :  { %695 = vmatprep.mubr.bf16.mxu0 %v458_v4 }
 0x1ec   :  { %696 = vmatmul.mubr.bf16.vlgmr.msra.gmra.mxu0 %v457_v5 }
 0x1ed   :  { %1301 = vmatpush3.bf16.msra.mxu0 %v1483_v13 }
 0x1ee   :  { %1302 = vmatprep.subr.bf16.mxu0 %v1484_v14 }
 0x1f1   :  { %1303 = vmatpush3.bf16.msra.mxu0 %v1485_v15 }
 0x1f2   :  { %1304 = vmatprep.subr.bf16.mxu0 %v1486_v16 }
 0x1f5   :  { %1305 = vmatpush3.bf16.msra.mxu0 %v1487_v17 }
 0x1f6   :  { %1306 = vmatprep.subr.bf16.mxu0 %v1488_v18 }
 0x1f9   :  { %1307 = vmatpush3.bf16.msra.mxu0 %v1489_v19 }
 0x1fa   :  { %1308 = vmatprep.subr.bf16.mxu0 %v1490_v20 }
 0x1fd   :  { %1309 = vmatpush3.bf16.msra.mxu0 %v1491_v21 }
 0x1fe   :  { %1310 = vmatprep.subr.bf16.mxu0 %v1492_v39 }
 0x201   :  { %1311 = vmatpush3.bf16.msra.mxu0 %v1493_v40 }
 0x202   :  { %1312 = vmatprep.subr.bf16.mxu0 %v1494_v41 }
 0x205   :  { %1313 = vmatpush3.bf16.msra.mxu0 %v1495_v42 }
 0x206   :  { %1314 = vmatprep.subr.bf16.mxu0 %v1496_v43 }
 0x209   :  { %1315 = vmatpush3.bf16.msra.mxu0 %v1497_v44 }
 0x2ac   :  { %v697_v23 = vpop.f32.mrf.mxu0 }
 0x2ad   :  { %v698_v30 = vadd.f32 %v697_v23, %v496_v25 }
 0x2ae   :  { %v699_v26 = vpop.f32.mrf.mxu0 }
 0x2af   :  { %v700_v28 = vadd.f32 %v699_v26, %v500_v24  ;;  %v706_v36 = vmax.f32 %v698_v30, 0.0 }
 0x2b0   :  { %v701_v27 = vpop.f32.mrf.mxu0 }
 0x2b1   :  { %v702_v29 = vadd.f32 %v701_v27, %v496_v25  ;;  %v707_v34 = vmax.f32 %v700_v28, 0.0 }
 0x2b2   :  { %v703_v31 = vpop.f32.mrf.mxu0 }
 0x2b3   :  { %v704_v32 = vadd.f32 %v703_v31, %v500_v24  ;;  %v708_v33 = vmax.f32 %v702_v29, 0.0 }
 0x2b5   :  { %v709_v35 = vmax.f32 %v704_v32, 0.0  ;;  %v710_v38 = vpack.c.bf16 %v708_v33, %v706_v36 }
 0x2b7   :  { %v711_v37 = vpack.c.bf16 %v709_v35, %v707_v34 }
 0x2b9   :  { %948 = vmatprep.mubr.bf16.mxu1 %v711_v37 }
 0x2ba   :  { %949 = vmatmul.mubr.bf16.vlgmr.msra.gmra.mxu1 %v710_v38 }
 0x37a   :  { %v950_v46 = vpop.f32.mrf.mxu1 }
 0x37b   :  { %v951_v53 = vadd.f32 %v950_v46, %v749_v48 }
 0x37c   :  { %v952_v49 = vpop.f32.mrf.mxu1 }
 0x37d   :  { %v953_v51 = vadd.f32 %v952_v49, %v753_v47  ;;  %v959_v59 = vmax.f32 %v951_v53, 0.0 }
 0x37e   :  { %v954_v50 = vpop.f32.mrf.mxu1 }
 0x37f   :  { %v955_v52 = vadd.f32 %v954_v50, %v749_v48  ;;  %v960_v57 = vmax.f32 %v953_v51, 0.0 }
 0x380   :  { %v956_v54 = vpop.f32.mrf.mxu1 }
 0x381   :  { %v957_v55 = vadd.f32 %v956_v54, %v753_v47  ;;  %v961_v56 = vmax.f32 %v955_v52, 0.0 }
 0x383   :  { %v962_v58 = vmax.f32 %v957_v55, 0.0  ;;  %v963_v61 = vpack.c.bf16 %v961_v56, %v959_v59 }
 0x385   :  { %v964_v60 = vpack.c.bf16 %v962_v58, %v960_v57 }
 0x387   :  { %1132 = vmatprep.mubr.bf16.mxu0 %v964_v60 }
 0x388   :  { %1133 = vmatmul.mubr.bf16.vlgmr.msra.gmra.mxu0 %v963_v61 }
 0x448   :  { %v1316_v62 = vpop.f32.mrf.mxu0 }
 0x44a   :  { %v1317_v63 = vpop.f32.mrf.mxu0 }
 0x44b   :  { %v1318_v1 = vadd.f32 %v1317_v63, %v1316_v62 }
 0x44c   :  { %v1319_v2 = vpop.f32.mrf.mxu0 }
 0x44d   :  { %v1135_v3 = vadd.f32 %v1318_v1, %v1283_v0 }
 0x44e   :  { %v1320_v4 = vpop.f32.mrf.mxu0 }
 0x44f   :  { %v1321_v5 = vadd.f32 %v1320_v4, %v1319_v2  ;;  %1141 = vmax.xlane.f32.xlu0 %v1135_v3 }
 0x451   :  { %v1138_v6 = vadd.f32 %v1321_v5, %v1283_v0 }
 0x453   :  { %1143 = vmax.xlane.f32.xlu0 %v1138_v6 }
 0x4d8   :  { %v1142_v7 = vpop.xlane.xlu0 %1141 }
 0x4d9   :  { %v1145_v8 = vsub.f32 %v1135_v3, %v1142_v7 }
 0x4db   :  { %v1147_v9 = vmul.f32 1.442695, %v1145_v8 }
 0x4dc   :  { %v1144_v10 = vpop.xlane.xlu0 %1143 }
 0x4dd   :  { %v1146_v11 = vsub.f32 %v1138_v6, %v1144_v10  ;;  %1498 = vpow2.f32 %v1147_v9 }
 0x4df   :  { %v1149_v12 = vmul.f32 1.442695, %v1146_v11 }
 0x4e1   :  { %1500 = vpow2.f32 %v1149_v12 }
 0x4ea   :  { %v1499_v13 = vpop.eup %1498 }
 0x4eb   :  { %1151 = vadd.xlane.f32.xlu1 %v1499_v13 }
 0x4ee   :  { %v1501_v14 = vpop.eup %1500 }
 0x4ef   :  { %1153 = vadd.xlane.f32.xlu1 %v1501_v14 }
 0x574   :  { %v1152_v15 = vpop.xlane.xlu1 %1151 }
 0x575   :  { %1502 = vlog2.f32 %v1152_v15 }
 0x578   :  { %v1154_v16 = vpop.xlane.xlu1 %1153 }
 0x579   :  { %1504 = vlog2.f32 %v1154_v16 }
 0x582   :  { %v1503_v17 = vpop.eup %1502 }
 0x583   :  { %v1156_v18 = vmul.f32 0.6931472, %v1503_v17 }
 0x585   :  { %v1159_v19 = vsub.f32 %v1145_v8, %v1156_v18 }
 0x586   :  { %v1505_v20 = vpop.eup %1504 }
 0x587   :  { %v1158_v21 = vmul.f32 0.6931472, %v1505_v20  ;;  %1161 = vst [vmem:[#allocation13] sm:$0xff] %v1159_v19 }
 0x589   :  { %v1160_v22 = vsub.f32 %v1146_v11, %v1158_v21 }
 0x58b   :  { %1162 = vst [vmem:[#allocation13 + $0x8] sm:$0xff] %v1160_v22 }
 0x58c   :  { %1637 = shalt.err (!%p1634_p6)
}
 0x58d   :  { %1174 = dma.vmem_to_hbm [thread:$0]  %s1169_s14, 256, %s1808_s11, [#allocation4], %s1657_s20, %s1657_s20, %s1658_s21  }
 0x58e   :  { %1654 = dma.done.wait [#allocation4], 256  }
 0x58f   :  { %1655 = vsyncadd [#allocation4], 4294967040 }
 0x590   :  { %1178 = vsyncpa [#allocation3], 1 }
 0x591   :  { %1179 = vsyncpa [#allocation6], 1 }
 0x592   :  { %1180 = vsyncpa [#allocation9], 1 }
 0x593   :  { %1181 = vsyncpa [#allocation12], 1 }
 0x594   :  { %1182 = vsyncpa [#allocation4], 1 }

// kernel: tpu_custom_call.1
= control target key start
LH: loop header
LB: loop body
LE: loop exit
PB: predicated region body
PF: predicated region fallthrough
CT: control target
= control target key end

     0   :  { %16 = vsyncpa [#allocation3], 0  ;;  %s1797_s0 = inlined_call_operand.hbm [shape: bf16[16,16], index: 0, kind: input, shape index: {}]   ;;  %s1798_s1 = inlined_call_operand.hbm [shape: bf16[16,256], index: 1, kind: input, shape index: {}]   ;;  %s1799_s2 = inlined_call_operand.vmem [shape: f32[1,256], index: 2, kind: input, shape index: {}]   ;;  %s1800_s3 = inlined_call_operand.hbm [shape: bf16[256,256], index: 3, kind: input, shape index: {}]   ;;  %s1801_s4 = inlined_call_operand.vmem [shape: f32[1,256], index: 4, kind: input, shape index: {}]   ;;  %s1802_s5 = inlined_call_operand.hbm [shape: bf16[256,256], index: 5, kind: input, shape index: {}]   ;;  %s1803_s6 = inlined_call_operand.vmem [shape: f32[1,256], index: 6, kind: input, shape index: {}]   ;;  %s1804_s7 = inlined_call_operand.hbm [shape: bf16[256,256], index: 7, kind: input, shape index: {}]   ;;  %s1805_s8 = inlined_call_operand.vmem [shape: f32[1,256], index: 8, kind: input, shape index: {}]   ;;  %s1806_s9 = inlined_call_operand.hbm [shape: bf16[256,128], index: 9, kind: input, shape index: {}]   ;;  %s1807_s10 = inlined_call_operand.vmem [shape: f32[1,128], index: 10, kind: input, shape index: {}]   ;;  %s1808_s11 = inlined_call_operand.hbm [shape: f32[16,128], index: 11, kind: output, shape index: {}]  }
   0x1   :  { %17 = vsyncpa [#allocation6], 0 }
   0x2   :  { %18 = vsyncpa [#allocation9], 0 }
   0x3   :  { %19 = vsyncpa [#allocation12], 0 }
   0x4   :  { %20 = vsyncpa [#allocation4], 0  ;;  %s1656_s17 = smov [#allocation5]  }
   0x5   :  { %s38_s18 = sshll.u32 %s1656_s17, 4  ;;  %s39_s18 = int_to_ptr.vmem [resolvable:$true] %s38_s18 }
   0x6   :  { %s1514_s19 = scalar_lea.vmem %s39_s18, 256  ;;  %p1519_p1 = scmp.lt.s32.totalorder %s39_s18, %s39_s18 }
   0x7   :  { %p1515_p0 = scmp.ne.s32.totalorder %s39_s18, %s1514_s19  ;;  %p1520_p2 = scmp.lt.s32.totalorder %s1514_s19, %s1514_s19 }
   0x9   :  { %p1521_p3 = por %p1520_p2, %p1519_p1 }
   0xb   :  { %p1522_p4 = pnand %p1521_p3, %p1515_p0 }
   0xd   :  { %1525 = shalt.err (!%p1522_p4)
}
   0xe   :  { %s1657_s20 = smov 128   ;;  %s1658_s21 = smov 8  }
   0xf   :  { %44 = dma.hbm_to_vmem [thread:$0]  %s1798_s1, 256, %s39_s18, [#allocation6], %s1657_s20, %s1657_s20, %s1658_s21  }
  0x10   :  { %s1659_s24 = smov [#allocation8]   ;;  %s1660_s26 = smov [#allocation2]  }
  0x11   :  { %s66_s25 = sshll.u32 %s1659_s24, 4  ;;  %s26_s27 = sshll.u32 %s1660_s26, 4  ;;  %s67_s25 = int_to_ptr.vmem [resolvable:$true] %s66_s25  ;;  %s27_s27 = int_to_ptr.vmem [resolvable:$true] %s26_s27 }
  0x12   :  { %s1534_s28 = scalar_lea.vmem %s67_s25, 4096  ;;  %p1539_p6 = scmp.lt.s32.totalorder %s67_s25, %s67_s25 }
  0x13   :  { %p1535_p5 = scmp.ne.s32.totalorder %s67_s25, %s1534_s28  ;;  %p1540_p7 = scmp.lt.s32.totalorder %s1534_s28, %s1534_s28 }
  0x15   :  { %p1541_p8 = por %p1540_p7, %p1539_p6 }
  0x17   :  { %p1542_p9 = pnand %p1541_p8, %p1535_p5 }
  0x19   :  { %1545 = shalt.err (!%p1542_p9)
}
  0x1a   :  { %72 = dma.hbm_to_vmem [thread:$0]  %s1802_s5, 4096, %s67_s25, [#allocation9], %s1657_s20, %s1657_s20, %s1658_s21  }
  0x1b   :  { %s1554_s1 = scalar_lea.vmem %s27_s27, 128  ;;  %p1559_p11 = scmp.lt.s32.totalorder %s27_s27, %s27_s27 }
  0x1c   :  { %p1555_p10 = scmp.ne.s32.totalorder %s27_s27, %s1554_s1  ;;  %p1560_p12 = scmp.lt.s32.totalorder %s1554_s1, %s1554_s1 }
  0x1e   :  { %p1561_p13 = por %p1560_p12, %p1559_p11 }
  0x20   :  { %p1562_p0 = pnand %p1561_p13, %p1555_p10 }
  0x22   :  { %1565 = shalt.err (!%p1562_p0)
}
  0x23   :  { %s1661_s12 = smov 64   ;;  %s1662_s13 = smov 4  }
  0x24   :  { %32 = dma.hbm_to_vmem [thread:$0]  %s1797_s0, 128, %s27_s27, [#allocation3], %s1661_s12, %s1661_s12, %s1662_s13  }
  0x25   :  { %s1663_s16 = smov [#allocation7]   ;;  %s1664_s5 = smov [#allocation10]  }
  0x26   :  { %s52_s17 = sshll.u32 %s1663_s16, 4  ;;  %s80_s18 = sshll.u32 %s1664_s5, 4  ;;  %s53_s17 = int_to_ptr.vmem [resolvable:$true] %s52_s17  ;;  %s81_s18 = int_to_ptr.vmem [resolvable:$true] %s80_s18 }
  0x27   :  { %s1574_s19 = scalar_lea.vmem %s53_s17, 4096  ;;  %p1579_p2 = scmp.lt.s32.totalorder %s53_s17, %s53_s17 }
  0x28   :  { %p1575_p1 = scmp.ne.s32.totalorder %s53_s17, %s1574_s19  ;;  %p1580_p3 = scmp.lt.s32.totalorder %s1574_s19, %s1574_s19 }
  0x2a   :  { %p1581_p4 = por %p1580_p3, %p1579_p2 }
  0x2c   :  { %p1582_p5 = pnand %p1581_p4, %p1575_p1 }
  0x2e   :  { %1585 = shalt.err (!%p1582_p5)
}
  0x2f   :  { %58 = dma.hbm_to_vmem [thread:$0]  %s1800_s3, 4096, %s53_s17, [#allocation6], %s1657_s20, %s1657_s20, %s1658_s21  }
  0x30   :  { %s1594_s0 = scalar_lea.vmem %s81_s18, 4096  ;;  %p1599_p7 = scmp.lt.s32.totalorder %s81_s18, %s81_s18 }
  0x31   :  { %p1595_p6 = scmp.ne.s32.totalorder %s81_s18, %s1594_s0  ;;  %p1600_p8 = scmp.lt.s32.totalorder %s1594_s0, %s1594_s0 }
  0x33   :  { %p1601_p9 = por %p1600_p8, %p1599_p7 }
  0x35   :  { %p1602_p10 = pnand %p1601_p9, %p1595_p6 }
  0x37   :  { %1605 = shalt.err (!%p1602_p10)
}
  0x38   :  { %86 = dma.hbm_to_vmem [thread:$0]  %s1804_s7, 4096, %s81_s18, [#allocation9], %s1657_s20, %s1657_s20, %s1658_s21  }
  0x39   :  { %s1665_s26 = smov [#allocation11]  }
  0x3a   :  { %s94_s27 = sshll.u32 %s1665_s26, 4  ;;  %s95_s27 = int_to_ptr.vmem [resolvable:$true] %s94_s27 }
  0x3b   :  { %s1614_s28 = scalar_lea.vmem %s95_s27, 2048  ;;  %p1619_p12 = scmp.lt.s32.totalorder %s95_s27, %s95_s27 }
  0x3c   :  { %p1615_p11 = scmp.ne.s32.totalorder %s95_s27, %s1614_s28  ;;  %p1620_p13 = scmp.lt.s32.totalorder %s1614_s28, %s1614_s28 }
  0x3e   :  { %p1621_p0 = por %p1620_p13, %p1619_p12 }
  0x40   :  { %p1622_p1 = pnand %p1621_p0, %p1615_p11 }
  0x42   :  { %1625 = shalt.err (!%p1622_p1)
}
  0x43   :  { %100 = dma.hbm_to_vmem [thread:$0]  %s1806_s9, 2048, %s95_s27, [#allocation12], %s1661_s12, %s1661_s12, %s1662_s13  }
  0x44   :  { %1646 = dma.done.wait [#allocation3], 128  }
  0x45   :  { %1647 = vsyncadd [#allocation3], 4294967168 }
  0x46   :  { %1648 = dma.done.wait [#allocation6], 4352  }
  0x47   :  { %1649 = vsyncadd [#allocation6], 4294962944 }
  0x48   :  { %1650 = dma.done.wait [#allocation9], 8192  }
  0x49   :  { %1651 = vsyncadd [#allocation9], 4294959104 }
  0x4a   :  { %1652 = dma.done.wait [#allocation12], 2048  }
  0x4b   :  { %1653 = vsyncadd [#allocation12], 4294965248  ;;  %v1666_v0 = vmov 0   ;;  %v1334_v1 = vld [vmem:[#allocation5 + $0x4] ss:$8 sps:$4 sm:$0xff]   ;;  %v1337_v3 = vld [vmem:[#allocation2] sm:$0xff]   ;;  %v128_v62 = vlaneseq }
  0x4c   :  { %189 = vmatprep.mubr.bf16.mxu0 %v1666_v0  ;;  %v1336_v2 = vld [vmem:[#allocation5] ss:$8 sps:$4 sm:$0xff]   ;;  %171 = vmatprep.subr.bf16.mxu0 %v1334_v1  ;;  %vm153_vm0 = vcmask 130048   ;;  %v1338_v4 = vld [vmem:[#allocation7 + $0x74] ss:$8 sps:$4 sm:$0xff]  }
  0x4d   :  { %172 = vmatpush1.bf16.msra.mxu0 %v1336_v2  ;;  %v1340_v5 = vld [vmem:[#allocation7 + $0x70] ss:$8 sps:$4 sm:$0xff]   ;;  %v1341_v6 = vld [vmem:[#allocation7 + $0x64] ss:$8 sps:$4 sm:$0xff]   ;;  %410 = vmatprep.subr.bf16.mxu1 %v1338_v4  ;;  %v1343_v7 = vld [vmem:[#allocation7 + $0x60] ss:$8 sps:$4 sm:$0xff]  }
  0x4e   :  { %411 = vmatpush1.bf16.msra.mxu1 %v1340_v5  ;;  %v1344_v8 = vld [vmem:[#allocation7 + $0x54] ss:$8 sps:$4 sm:$0xff]   ;;  %v1346_v9 = vld [vmem:[#allocation7 + $0x50] ss:$8 sps:$4 sm:$0xff]   ;;  %v1347_v10 = vld [vmem:[#allocation7 + $0x44] ss:$8 sps:$4 sm:$0xff]  }
  0x4f   :  { %412 = vmatprep.subr.bf16.mxu1 %v1341_v6  ;;  %v1349_v11 = vld [vmem:[#allocation7 + $0x40] ss:$8 sps:$4 sm:$0xff]   ;;  %v1350_v12 = vld [vmem:[#allocation7 + $0x34] ss:$8 sps:$4 sm:$0xff]   ;;  %v1352_v13 = vld [vmem:[#allocation7 + $0x30] ss:$8 sps:$4 sm:$0xff]  }
  0x50   :  { %1186 = vmatmul.mubr.msk.bf16.vlgmr.msra.gmra.mxu0 %vm153_vm0, %v1337_v3  ;;  %v1353_v14 = vld [vmem:[#allocation7 + $0x24] ss:$8 sps:$4 sm:$0xff]   ;;  %v1355_v15 = vld [vmem:[#allocation7 + $0x20] ss:$8 sps:$4 sm:$0xff]   ;;  %v1356_v16 = vld [vmem:[#allocation7 + $0x14] ss:$8 sps:$4 sm:$0xff]  }
  0x51   :  { %v1358_v17 = vld [vmem:[#allocation7 + $0x10] ss:$8 sps:$4 sm:$0xff]   ;;  %v1359_v18 = vld [vmem:[#allocation7 + $0x4] ss:$8 sps:$4 sm:$0xff]   ;;  %v1361_v19 = vld [vmem:[#allocation7] ss:$8 sps:$4 sm:$0xff]  }
  0x52   :  { %413 = vmatpush1.bf16.msra.mxu1 %v1343_v7  ;;  %v1362_v20 = vld [vmem:[#allocation7 + $0xf4] ss:$8 sps:$4 sm:$0xff]   ;;  %v1364_v21 = vld [vmem:[#allocation7 + $0xf0] ss:$8 sps:$4 sm:$0xff]   ;;  %v1365_v22 = vld [vmem:[#allocation7 + $0xe4] ss:$8 sps:$4 sm:$0xff]  }
  0x53   :  { %414 = vmatprep.subr.bf16.mxu1 %v1344_v8  ;;  %v1367_v23 = vld [vmem:[#allocation7 + $0xe0] ss:$8 sps:$4 sm:$0xff]   ;;  %v1368_v24 = vld [vmem:[#allocation7 + $0xd4] ss:$8 sps:$4 sm:$0xff]   ;;  %v1370_v25 = vld [vmem:[#allocation7 + $0xd0] ss:$8 sps:$4 sm:$0xff]  }
  0x54   :  { %v1371_v26 = vld [vmem:[#allocation7 + $0xc4] ss:$8 sps:$4 sm:$0xff]   ;;  %v1373_v27 = vld [vmem:[#allocation7 + $0xc0] ss:$8 sps:$4 sm:$0xff]   ;;  %v1374_v28 = vld [vmem:[#allocation7 + $0xb4] ss:$8 sps:$4 sm:$0xff]  }
  0x55   :  { %v1376_v29 = vld [vmem:[#allocation7 + $0xb0] ss:$8 sps:$4 sm:$0xff]   ;;  %v1377_v30 = vld [vmem:[#allocation7 + $0xa4] ss:$8 sps:$4 sm:$0xff]   ;;  %v1379_v31 = vld [vmem:[#allocation7 + $0xa0] ss:$8 sps:$4 sm:$0xff]  }
  0x56   :  { %415 = vmatpush1.bf16.msra.mxu1 %v1346_v9  ;;  %v1380_v32 = vld [vmem:[#allocation7 + $0x94] ss:$8 sps:$4 sm:$0xff]   ;;  %v1382_v33 = vld [vmem:[#allocation7 + $0x90] ss:$8 sps:$4 sm:$0xff]   ;;  %v1383_v34 = vld [vmem:[#allocation7 + $0x84] ss:$8 sps:$4 sm:$0xff]  }
  0x57   :  { %416 = vmatprep.subr.bf16.mxu1 %v1347_v10  ;;  %v1385_v35 = vld [vmem:[#allocation7 + $0x80] ss:$8 sps:$4 sm:$0xff]   ;;  %v1386_v36 = vld [vmem:[#allocation8 + $0x70] ss:$8 sps:$4 sm:$0xff]   ;;  %v1388_v37 = vld [vmem:[#allocation8 + $0x74] ss:$8 sps:$4 sm:$0xff]  }
  0x58   :  { %v1391_v38 = vld [vmem:[#allocation8 + $0x64] ss:$8 sps:$4 sm:$0xff]   ;;  %663 = vmatprep.subr.bf16.mxu0 %v1388_v37  ;;  %v1389_v39 = vld [vmem:[#allocation8 + $0x60] ss:$8 sps:$4 sm:$0xff]   ;;  %v1394_v40 = vld [vmem:[#allocation8 + $0x54] ss:$8 sps:$4 sm:$0xff]  }
  0x59   :  { %664 = vmatpush1.bf16.msra.mxu0 %v1386_v36  ;;  %v1392_v41 = vld [vmem:[#allocation8 + $0x50] ss:$8 sps:$4 sm:$0xff]   ;;  %v1397_v42 = vld [vmem:[#allocation8 + $0x44] ss:$8 sps:$4 sm:$0xff]   ;;  %v1395_v43 = vld [vmem:[#allocation8 + $0x40] ss:$8 sps:$4 sm:$0xff]  }
  0x5a   :  { %417 = vmatpush1.bf16.msra.mxu1 %v1349_v11  ;;  %665 = vmatprep.subr.bf16.mxu0 %v1391_v38  ;;  %v1400_v44 = vld [vmem:[#allocation8 + $0x34] ss:$8 sps:$4 sm:$0xff]   ;;  %v1398_v45 = vld [vmem:[#allocation8 + $0x30] ss:$8 sps:$4 sm:$0xff]   ;;  %v1403_v46 = vld [vmem:[#allocation8 + $0x24] ss:$8 sps:$4 sm:$0xff]  }
  0x5b   :  { %418 = vmatprep.subr.bf16.mxu1 %v1350_v12  ;;  %v1401_v47 = vld [vmem:[#allocation8 + $0x20] ss:$8 sps:$4 sm:$0xff]   ;;  %v1406_v48 = vld [vmem:[#allocation8 + $0x14] ss:$8 sps:$4 sm:$0xff]   ;;  %v1404_v49 = vld [vmem:[#allocation8 + $0x10] ss:$8 sps:$4 sm:$0xff]  }
  0x5c   :  { %v1409_v50 = vld [vmem:[#allocation8 + $0x4] ss:$8 sps:$4 sm:$0xff]   ;;  %v1407_v51 = vld [vmem:[#allocation8] ss:$8 sps:$4 sm:$0xff]   ;;  %v1412_v52 = vld [vmem:[#allocation8 + $0xf4] ss:$8 sps:$4 sm:$0xff]  }
  0x5d   :  { %666 = vmatpush1.bf16.msra.mxu0 %v1389_v39  ;;  %v1410_v53 = vld [vmem:[#allocation8 + $0xf0] ss:$8 sps:$4 sm:$0xff]   ;;  %v1415_v54 = vld [vmem:[#allocation8 + $0xe4] ss:$8 sps:$4 sm:$0xff]   ;;  %v1413_v55 = vld [vmem:[#allocation8 + $0xe0] ss:$8 sps:$4 sm:$0xff]  }
  0x5e   :  { %419 = vmatpush1.bf16.msra.mxu1 %v1352_v13  ;;  %667 = vmatprep.subr.bf16.mxu0 %v1394_v40  ;;  %v1418_v56 = vld [vmem:[#allocation8 + $0xd4] ss:$8 sps:$4 sm:$0xff]   ;;  %v1416_v57 = vld [vmem:[#allocation8 + $0xd0] ss:$8 sps:$4 sm:$0xff]   ;;  %v1421_v58 = vld [vmem:[#allocation8 + $0xc4] ss:$8 sps:$4 sm:$0xff]  }
  0x5f   :  { %420 = vmatprep.subr.bf16.mxu1 %v1353_v14  ;;  %v1419_v59 = vld [vmem:[#allocation8 + $0xc0] ss:$8 sps:$4 sm:$0xff]   ;;  %v1424_v60 = vld [vmem:[#allocation8 + $0xb4] ss:$8 sps:$4 sm:$0xff]   ;;  %v1422_v61 = vld [vmem:[#allocation8 + $0xb0] ss:$8 sps:$4 sm:$0xff]  }
  0x60   :  { %v129_v63 = vshrl.u32 %v128_v62, 7  ;;  %v126_v2 = vld [vmem:[%s1799_s2] sm:$0x3]  ;;  %v1454_v37 = vld [vmem:[#allocation10 + $0x14] ss:$8 sps:$4 sm:$0xff]  }
  0x61   :  { %668 = vmatpush1.bf16.msra.mxu0 %v1392_v41  ;;  %v1449_v36 = vld [vmem:[#allocation10 + $0x20] ss:$8 sps:$4 sm:$0xff]   ;;  %v1452_v38 = vld [vmem:[#allocation10 + $0x10] ss:$8 sps:$4 sm:$0xff]   ;;  %v1457_v39 = vld [vmem:[#allocation10 + $0x4] ss:$8 sps:$4 sm:$0xff]  }
  0x62   :  { %421 = vmatpush1.bf16.msra.mxu1 %v1355_v15  ;;  %669 = vmatprep.subr.bf16.mxu0 %v1397_v42  ;;  %v1764_v0 = vsub.s32 1, %v129_v63  ;;  %v1766_v1 = vsub.s32 0, %v129_v63  ;;  %v1455_v40 = vld [vmem:[#allocation10] ss:$8 sps:$4 sm:$0xff]   ;;  %v1460_v41 = vld [vmem:[#allocation10 + $0xf4] ss:$8 sps:$4 sm:$0xff]  }
  0x63   :  { %422 = vmatprep.subr.bf16.mxu1 %v1356_v16  ;;  %v1458_v42 = vld [vmem:[#allocation10 + $0xf0] ss:$8 sps:$4 sm:$0xff]  }
  0x64   :  { %v135_v4 = vrot.slane %v126_v2, %v1764_v0  ;;  %v131_v5 = vrot.slane %v126_v2, %v1766_v1 }
  0x65   :  { %670 = vmatpush1.bf16.msra.mxu0 %v1395_v43  ;;  %v1463_v43 = vld [vmem:[#allocation10 + $0xe4] ss:$8 sps:$4 sm:$0xff]  }
  0x66   :  { %423 = vmatpush1.bf16.msra.mxu1 %v1358_v17  ;;  %671 = vmatprep.subr.bf16.mxu0 %v1400_v44  ;;  %v1461_v44 = vld [vmem:[#allocation10 + $0xe0] ss:$8 sps:$4 sm:$0xff]  }
  0x67   :  { %424 = vmatprep.subr.bf16.mxu1 %v1359_v18 }
  0x69   :  { %672 = vmatpush1.bf16.msra.mxu0 %v1398_v45  ;;  %v1466_v45 = vld [vmem:[#allocation10 + $0xd4] ss:$8 sps:$4 sm:$0xff]  }
  0x6a   :  { %425 = vmatpush1.bf16.msra.mxu1 %v1361_v19  ;;  %673 = vmatprep.subr.bf16.mxu0 %v1403_v46  ;;  %v1427_v19 = vld [vmem:[#allocation8 + $0xa4] ss:$8 sps:$4 sm:$0xff]   ;;  %v1464_v46 = vld [vmem:[#allocation10 + $0xd0] ss:$8 sps:$4 sm:$0xff]  }
  0x6b   :  { %426 = vmatprep.subr.bf16.mxu1 %v1362_v20  ;;  %v1425_v20 = vld [vmem:[#allocation8 + $0xa0] ss:$8 sps:$4 sm:$0xff]  }
  0x6d   :  { %674 = vmatpush1.bf16.msra.mxu0 %v1401_v47  ;;  %v1469_v47 = vld [vmem:[#allocation10 + $0xc4] ss:$8 sps:$4 sm:$0xff]  }
  0x6e   :  { %427 = vmatpush2.bf16.msra.mxu1 %v1364_v21  ;;  %675 = vmatprep.subr.bf16.mxu0 %v1406_v48  ;;  %v1430_v21 = vld [vmem:[#allocation8 + $0x94] ss:$8 sps:$4 sm:$0xff]   ;;  %v1467_v48 = vld [vmem:[#allocation10 + $0xc0] ss:$8 sps:$4 sm:$0xff]  }
  0x6f   :  { %428 = vmatprep.subr.bf16.mxu1 %v1365_v22  ;;  %v1428_v22 = vld [vmem:[#allocation8 + $0x90] ss:$8 sps:$4 sm:$0xff]  }
  0x71   :  { %676 = vmatpush1.bf16.msra.mxu0 %v1404_v49  ;;  %v1472_v49 = vld [vmem:[#allocation10 + $0xb4] ss:$8 sps:$4 sm:$0xff]  }
  0x72   :  { %429 = vmatpush2.bf16.msra.mxu1 %v1367_v23  ;;  %677 = vmatprep.subr.bf16.mxu0 %v1409_v50  ;;  %v1433_v23 = vld [vmem:[#allocation8 + $0x84] ss:$8 sps:$4 sm:$0xff]   ;;  %v1470_v50 = vld [vmem:[#allocation10 + $0xb0] ss:$8 sps:$4 sm:$0xff]  }
  0x73   :  { %430 = vmatprep.subr.bf16.mxu1 %v1368_v24  ;;  %v1431_v24 = vld [vmem:[#allocation8 + $0x80] ss:$8 sps:$4 sm:$0xff]  }
  0x75   :  { %678 = vmatpush1.bf16.msra.mxu0 %v1407_v51  ;;  %v238_v51 = vld [vmem:[%s1801_s4] sm:$0x3] }
  0x76   :  { %431 = vmatpush2.bf16.msra.mxu1 %v1370_v25  ;;  %679 = vmatprep.subr.bf16.mxu0 %v1412_v52  ;;  %v1434_v25 = vld [vmem:[#allocation10 + $0x70] ss:$8 sps:$4 sm:$0xff]  }
  0x77   :  { %432 = vmatprep.subr.bf16.mxu1 %v1371_v26  ;;  %v1436_v26 = vld [vmem:[#allocation10 + $0x74] ss:$8 sps:$4 sm:$0xff]  }
  0x79   :  { %680 = vmatpush2.bf16.msra.mxu0 %v1410_v53  ;;  %v247_v53 = vrot.slane %v238_v51, %v1764_v0 }
  0x7a   :  { %433 = vmatpush2.bf16.msra.mxu1 %v1373_v27  ;;  %681 = vmatprep.subr.bf16.mxu0 %v1415_v54  ;;  %v1439_v27 = vld [vmem:[#allocation10 + $0x64] ss:$8 sps:$4 sm:$0xff]   ;;  %v243_v54 = vrot.slane %v238_v51, %v1766_v1 }
  0x7b   :  { %434 = vmatprep.subr.bf16.mxu1 %v1374_v28  ;;  %v1437_v28 = vld [vmem:[#allocation10 + $0x60] ss:$8 sps:$4 sm:$0xff]  }
  0x7d   :  { %682 = vmatpush2.bf16.msra.mxu0 %v1413_v55 }
  0x7e   :  { %435 = vmatpush2.bf16.msra.mxu1 %v1376_v29  ;;  %683 = vmatprep.subr.bf16.mxu0 %v1418_v56  ;;  %v1442_v29 = vld [vmem:[#allocation10 + $0x54] ss:$8 sps:$4 sm:$0xff]  }
  0x7f   :  { %436 = vmatprep.subr.bf16.mxu1 %v1377_v30  ;;  %v1440_v30 = vld [vmem:[#allocation10 + $0x50] ss:$8 sps:$4 sm:$0xff]  }
  0x81   :  { %684 = vmatpush2.bf16.msra.mxu0 %v1416_v57 }
  0x82   :  { %437 = vmatpush2.bf16.msra.mxu1 %v1379_v31  ;;  %685 = vmatprep.subr.bf16.mxu0 %v1421_v58  ;;  %v1445_v31 = vld [vmem:[#allocation10 + $0x44] ss:$8 sps:$4 sm:$0xff]  }
  0x83   :  { %438 = vmatprep.subr.bf16.mxu1 %v1380_v32  ;;  %v1443_v32 = vld [vmem:[#allocation10 + $0x40] ss:$8 sps:$4 sm:$0xff]  }
  0x85   :  { %686 = vmatpush2.bf16.msra.mxu0 %v1419_v59 }
  0x86   :  { %439 = vmatpush2.bf16.msra.mxu1 %v1382_v33  ;;  %687 = vmatprep.subr.bf16.mxu0 %v1424_v60  ;;  %v1448_v33 = vld [vmem:[#allocation10 + $0x34] ss:$8 sps:$4 sm:$0xff]  }
  0x87   :  { %440 = vmatprep.subr.bf16.mxu1 %v1383_v34  ;;  %v1446_v34 = vld [vmem:[#allocation10 + $0x30] ss:$8 sps:$4 sm:$0xff]  }
  0x89   :  { %688 = vmatpush2.bf16.msra.mxu0 %v1422_v61 }
  0x8a   :  { %441 = vmatpush2.bf16.msra.mxu1 %v1385_v35  ;;  %689 = vmatprep.subr.bf16.mxu0 %v1427_v19  ;;  %v1451_v35 = vld [vmem:[#allocation10 + $0x24] ss:$8 sps:$4 sm:$0xff]  }
  0x8b   :  { %916 = vmatprep.subr.bf16.mxu1 %v1436_v26  ;;  %v1489_v19 = vld [vmem:[#allocation11 + $0x20] sm:$0xff]  }
  0x8d   :  { %690 = vmatpush2.bf16.msra.mxu0 %v1425_v20  ;;  %v1490_v20 = vld [vmem:[#allocation11 + $0x58] sm:$0xff]  }
  0x8e   :  { %691 = vmatprep.subr.bf16.mxu0 %v1430_v21  ;;  %v1491_v21 = vld [vmem:[#allocation11 + $0x18] sm:$0xff]  }
  0x91   :  { %692 = vmatpush2.bf16.msra.mxu0 %v1428_v22  ;;  %v491_v22 = vld [vmem:[%s1803_s6] sm:$0x3] }
  0x92   :  { %693 = vmatprep.subr.bf16.mxu0 %v1433_v23 }
  0x95   :  { %694 = vmatpush2.bf16.msra.mxu0 %v1431_v24  ;;  %v500_v24 = vrot.slane %v491_v22, %v1764_v0 }
 0x110   :  { %v191_v3 = vpop.f32.mrf.mxu0 }
 0x111   :  { %v192_v10 = vadd.f32 %v191_v3, %v131_v5 }
 0x112   :  { %v193_v6 = vpop.f32.mrf.mxu0 }
 0x113   :  { %v194_v8 = vadd.f32 %v193_v6, %v135_v4  ;;  %v200_v16 = vmax.f32 %v192_v10, 0.0  ;;  %v1475_v6 = vld [vmem:[#allocation10 + $0xa4] ss:$8 sps:$4 sm:$0xff]  }
 0x114   :  { %v195_v7 = vpop.f32.mrf.mxu0  ;;  %v1481_v10 = vld [vmem:[#allocation10 + $0x84] ss:$8 sps:$4 sm:$0xff]  }
 0x115   :  { %v196_v9 = vadd.f32 %v195_v7, %v131_v5  ;;  %v201_v14 = vmax.f32 %v194_v8, 0.0  ;;  %v1473_v7 = vld [vmem:[#allocation10 + $0xa0] ss:$8 sps:$4 sm:$0xff]   ;;  %v1478_v8 = vld [vmem:[#allocation10 + $0x94] ss:$8 sps:$4 sm:$0xff]  }
 0x116   :  { %v197_v11 = vpop.f32.mrf.mxu0 }
 0x117   :  { %v198_v12 = vadd.f32 %v197_v11, %v135_v4  ;;  %v202_v13 = vmax.f32 %v196_v9, 0.0  ;;  %v1476_v9 = vld [vmem:[#allocation10 + $0x90] ss:$8 sps:$4 sm:$0xff]   ;;  %v1479_v11 = vld [vmem:[#allocation10 + $0x80] ss:$8 sps:$4 sm:$0xff]  }
 0x119   :  { %v203_v15 = vmax.f32 %v198_v12, 0.0  ;;  %v204_v18 = vpack.c.bf16 %v202_v13, %v200_v16  ;;  %v1482_v12 = vld [vmem:[#allocation11 + $0x78] sm:$0xff]   ;;  %v1486_v16 = vld [vmem:[#allocation11 + $0x68] sm:$0xff]  }
 0x11a   :  { %v1483_v13 = vld [vmem:[#allocation11 + $0x38] sm:$0xff]   ;;  %1300 = vmatprep.subr.bf16.mxu0 %v1482_v12 }
 0x11b   :  { %v205_v17 = vpack.c.bf16 %v203_v15, %v201_v14  ;;  %v1484_v14 = vld [vmem:[#allocation11 + $0x70] sm:$0xff]  }
 0x11c   :  { %v1485_v15 = vld [vmem:[#allocation11 + $0x30] sm:$0xff]  }
 0x11d   :  { %442 = vmatprep.mubr.bf16.mxu1 %v205_v17  ;;  %v1487_v17 = vld [vmem:[#allocation11 + $0x28] sm:$0xff]  }
 0x11e   :  { %443 = vmatmul.mubr.bf16.vlgmr.msra.gmra.mxu1 %v204_v18  ;;  %v1488_v18 = vld [vmem:[#allocation11 + $0x60] sm:$0xff]  }
 0x11f   :  { %917 = vmatpush1.bf16.msra.mxu1 %v1434_v25  ;;  %v496_v25 = vrot.slane %v491_v22, %v1766_v1 }
 0x120   :  { %918 = vmatprep.subr.bf16.mxu1 %v1439_v27 }
 0x123   :  { %919 = vmatpush1.bf16.msra.mxu1 %v1437_v28 }
 0x124   :  { %920 = vmatprep.subr.bf16.mxu1 %v1442_v29 }
 0x127   :  { %921 = vmatpush1.bf16.msra.mxu1 %v1440_v30 }
 0x128   :  { %922 = vmatprep.subr.bf16.mxu1 %v1445_v31 }
 0x12b   :  { %923 = vmatpush1.bf16.msra.mxu1 %v1443_v32 }
 0x12c   :  { %924 = vmatprep.subr.bf16.mxu1 %v1448_v33 }
 0x12f   :  { %925 = vmatpush1.bf16.msra.mxu1 %v1446_v34 }
 0x130   :  { %926 = vmatprep.subr.bf16.mxu1 %v1451_v35 }
 0x133   :  { %927 = vmatpush1.bf16.msra.mxu1 %v1449_v36 }
 0x134   :  { %928 = vmatprep.subr.bf16.mxu1 %v1454_v37 }
 0x137   :  { %929 = vmatpush1.bf16.msra.mxu1 %v1452_v38 }
 0x138   :  { %930 = vmatprep.subr.bf16.mxu1 %v1457_v39  ;;  %v1492_v39 = vld [vmem:[#allocation11 + $0x50] sm:$0xff]  }
 0x13b   :  { %931 = vmatpush1.bf16.msra.mxu1 %v1455_v40  ;;  %v1493_v40 = vld [vmem:[#allocation11 + $0x10] sm:$0xff]  }
 0x13c   :  { %932 = vmatprep.subr.bf16.mxu1 %v1460_v41  ;;  %v1494_v41 = vld [vmem:[#allocation11 + $0x48] sm:$0xff]  }
 0x13f   :  { %933 = vmatpush2.bf16.msra.mxu1 %v1458_v42  ;;  %v1495_v42 = vld [vmem:[#allocation11 + $0x8] sm:$0xff]  }
 0x140   :  { %934 = vmatprep.subr.bf16.mxu1 %v1463_v43  ;;  %v1496_v43 = vld [vmem:[#allocation11 + $0x40] sm:$0xff]  }
 0x143   :  { %935 = vmatpush2.bf16.msra.mxu1 %v1461_v44  ;;  %v1497_v44 = vld [vmem:[#allocation11] sm:$0xff]  }
 0x144   :  { %936 = vmatprep.subr.bf16.mxu1 %v1466_v45  ;;  %v744_v45 = vld [vmem:[%s1805_s8] sm:$0x3] }
 0x147   :  { %937 = vmatpush2.bf16.msra.mxu1 %v1464_v46 }
 0x148   :  { %938 = vmatprep.subr.bf16.mxu1 %v1469_v47  ;;  %v753_v47 = vrot.slane %v744_v45, %v1764_v0  ;;  %v1283_v0 = vld [vmem:[%s1807_s10] ss:$0 sm:$0xff]  ;;  %s1667_s10 = smov [#allocation13]  }
 0x149   :  { %s1168_s14 = sshll.u32 %s1667_s10, 4  ;;  %s1169_s14 = int_to_ptr.vmem [resolvable:$true] %s1168_s14 }
 0x14a   :  { %s1626_s15 = scalar_lea.vmem %s1169_s14, 256  ;;  %p1631_p3 = scmp.lt.s32.totalorder %s1169_s14, %s1169_s14 }
 0x14b   :  { %939 = vmatpush2.bf16.msra.mxu1 %v1467_v48  ;;  %v749_v48 = vrot.slane %v744_v45, %v1766_v1  ;;  %p1627_p2 = scmp.ne.s32.totalorder %s1169_s14, %s1626_s15  ;;  %p1632_p4 = scmp.lt.s32.totalorder %s1626_s15, %s1626_s15 }
 0x14c   :  { %940 = vmatprep.subr.bf16.mxu1 %v1472_v49 }
 0x14d   :  { %p1633_p5 = por %p1632_p4, %p1631_p3 }
 0x14f   :  { %941 = vmatpush2.bf16.msra.mxu1 %v1470_v50  ;;  %p1634_p6 = pnand %p1633_p5, %p1627_p2 }
 0x150   :  { %942 = vmatprep.subr.bf16.mxu1 %v1475_v6 }
 0x153   :  { %943 = vmatpush2.bf16.msra.mxu1 %v1473_v7 }
 0x154   :  { %944 = vmatprep.subr.bf16.mxu1 %v1478_v8 }
 0x157   :  { %945 = vmatpush2.bf16.msra.mxu1 %v1476_v9 }
 0x158   :  { %946 = vmatprep.subr.bf16.mxu1 %v1481_v10 }
 0x15b   :  { %947 = vmatpush2.bf16.msra.mxu1 %v1479_v11 }
 0x1de   :  { %v444_v52 = vpop.f32.mrf.mxu1 }
 0x1df   :  { %v445_v59 = vadd.f32 %v444_v52, %v243_v54 }
 0x1e0   :  { %v446_v55 = vpop.f32.mrf.mxu1 }
 0x1e1   :  { %v447_v57 = vadd.f32 %v446_v55, %v247_v53  ;;  %v453_v3 = vmax.f32 %v445_v59, 0.0 }
 0x1e2   :  { %v448_v56 = vpop.f32.mrf.mxu1 }
 0x1e3   :  { %v449_v58 = vadd.f32 %v448_v56, %v243_v54  ;;  %v454_v63 = vmax.f32 %v447_v57, 0.0 }
 0x1e4   :  { %v450_v60 = vpop.f32.mrf.mxu1 }
 0x1e5   :  { %v451_v61 = vadd.f32 %v450_v60, %v247_v53  ;;  %v455_v62 = vmax.f32 %v449_v58, 0.0 }
 0x1e7   :  { %v456_v2 = vmax.f32 %v451_v61, 0.0  ;;  %v457_v5 = vpack.c.bf16 %v455_v62, %v453_v3 }
 0x1e9   :  { %v458_v4 = vpack.c.bf16 %v456_v2, %v454_v63 }
 0x1eb   :  { %695 = vmatprep.mubr.bf16.mxu0 %v458_v4 }
 0x1ec   :  { %696 = vmatmul.mubr.bf16.vlgmr.msra.gmra.mxu0 %v457_v5 }
 0x1ed   :  { %1301 = vmatpush3.bf16.msra.mxu0 %v1483_v13 }
 0x1ee   :  { %1302 = vmatprep.subr.bf16.mxu0 %v1484_v14 }
 0x1f1   :  { %1303 = vmatpush3.bf16.msra.mxu0 %v1485_v15 }
 0x1f2   :  { %1304 = vmatprep.subr.bf16.mxu0 %v1486_v16 }
 0x1f5   :  { %1305 = vmatpush3.bf16.msra.mxu0 %v1487_v17 }
 0x1f6   :  { %1306 = vmatprep.subr.bf16.mxu0 %v1488_v18 }
 0x1f9   :  { %1307 = vmatpush3.bf16.msra.mxu0 %v1489_v19 }
 0x1fa   :  { %1308 = vmatprep.subr.bf16.mxu0 %v1490_v20 }
 0x1fd   :  { %1309 = vmatpush3.bf16.msra.mxu0 %v1491_v21 }
 0x1fe   :  { %1310 = vmatprep.subr.bf16.mxu0 %v1492_v39 }
 0x201   :  { %1311 = vmatpush3.bf16.msra.mxu0 %v1493_v40 }
 0x202   :  { %1312 = vmatprep.subr.bf16.mxu0 %v1494_v41 }
 0x205   :  { %1313 = vmatpush3.bf16.msra.mxu0 %v1495_v42 }
 0x206   :  { %1314 = vmatprep.subr.bf16.mxu0 %v1496_v43 }
 0x209   :  { %1315 = vmatpush3.bf16.msra.mxu0 %v1497_v44 }
 0x2ac   :  { %v697_v23 = vpop.f32.mrf.mxu0 }
 0x2ad   :  { %v698_v30 = vadd.f32 %v697_v23, %v496_v25 }
 0x2ae   :  { %v699_v26 = vpop.f32.mrf.mxu0 }
 0x2af   :  { %v700_v28 = vadd.f32 %v699_v26, %v500_v24  ;;  %v706_v36 = vmax.f32 %v698_v30, 0.0 }
 0x2b0   :  { %v701_v27 = vpop.f32.mrf.mxu0 }
 0x2b1   :  { %v702_v29 = vadd.f32 %v701_v27, %v496_v25  ;;  %v707_v34 = vmax.f32 %v700_v28, 0.0 }
 0x2b2   :  { %v703_v31 = vpop.f32.mrf.mxu0 }
 0x2b3   :  { %v704_v32 = vadd.f32 %v703_v31, %v500_v24  ;;  %v708_v33 = vmax.f32 %v702_v29, 0.0 }
 0x2b5   :  { %v709_v35 = vmax.f32 %v704_v32, 0.0  ;;  %v710_v38 = vpack.c.bf16 %v708_v33, %v706_v36 }
 0x2b7   :  { %v711_v37 = vpack.c.bf16 %v709_v35, %v707_v34 }
 0x2b9   :  { %948 = vmatprep.mubr.bf16.mxu1 %v711_v37 }
 0x2ba   :  { %949 = vmatmul.mubr.bf16.vlgmr.msra.gmra.mxu1 %v710_v38 }
 0x37a   :  { %v950_v46 = vpop.f32.mrf.mxu1 }
 0x37b   :  { %v951_v53 = vadd.f32 %v950_v46, %v749_v48 }
 0x37c   :  { %v952_v49 = vpop.f32.mrf.mxu1 }
 0x37d   :  { %v953_v51 = vadd.f32 %v952_v49, %v753_v47  ;;  %v959_v59 = vmax.f32 %v951_v53, 0.0 }
 0x37e   :  { %v954_v50 = vpop.f32.mrf.mxu1 }
 0x37f   :  { %v955_v52 = vadd.f32 %v954_v50, %v749_v48  ;;  %v960_v57 = vmax.f32 %v953_v51, 0.0 }
 0x380   :  { %v956_v54 = vpop.f32.mrf.mxu1 }
 0x381   :  { %v957_v55 = vadd.f32 %v956_v54, %v753_v47  ;;  %v961_v56 = vmax.f32 %v955_v52, 0.0 }
 0x383   :  { %v962_v58 = vmax.f32 %v957_v55, 0.0  ;;  %v963_v61 = vpack.c.bf16 %v961_v56, %v959_v59 }
 0x385   :  { %v964_v60 = vpack.c.bf16 %v962_v58, %v960_v57 }
 0x387   :  { %1132 = vmatprep.mubr.bf16.mxu0 %v964_v60 }
 0x388   :  { %1133 = vmatmul.mubr.bf16.vlgmr.msra.gmra.mxu0 %v963_v61 }
 0x448   :  { %v1316_v62 = vpop.f32.mrf.mxu0 }
 0x44a   :  { %v1317_v63 = vpop.f32.mrf.mxu0 }
 0x44b   :  { %v1318_v1 = vadd.f32 %v1317_v63, %v1316_v62 }
 0x44c   :  { %v1319_v2 = vpop.f32.mrf.mxu0 }
 0x44d   :  { %v1135_v3 = vadd.f32 %v1318_v1, %v1283_v0 }
 0x44e   :  { %v1320_v4 = vpop.f32.mrf.mxu0 }
 0x44f   :  { %v1321_v5 = vadd.f32 %v1320_v4, %v1319_v2  ;;  %1141 = vmax.xlane.f32.xlu0 %v1135_v3 }
 0x451   :  { %v1138_v6 = vadd.f32 %v1321_v5, %v1283_v0 }
 0x453   :  { %1143 = vmax.xlane.f32.xlu0 %v1138_v6 }
 0x4d8   :  { %v1142_v7 = vpop.xlane.xlu0 %1141 }
 0x4d9   :  { %v1145_v8 = vsub.f32 %v1135_v3, %v1142_v7 }
 0x4db   :  { %v1147_v9 = vmul.f32 1.442695, %v1145_v8 }
 0x4dc   :  { %v1144_v10 = vpop.xlane.xlu0 %1143 }
 0x4dd   :  { %v1146_v11 = vsub.f32 %v1138_v6, %v1144_v10  ;;  %1498 = vpow2.f32 %v1147_v9 }
 0x4df   :  { %v1149_v12 = vmul.f32 1.442695, %v1146_v11 }
 0x4e1   :  { %1500 = vpow2.f32 %v1149_v12 }
 0x4ea   :  { %v1499_v13 = vpop.eup %1498 }
 0x4eb   :  { %1151 = vadd.xlane.f32.xlu1 %v1499_v13 }
 0x4ee   :  { %v1501_v14 = vpop.eup %1500 }
 0x4ef   :  { %1153 = vadd.xlane.f32.xlu1 %v1501_v14 }
 0x574   :  { %v1152_v15 = vpop.xlane.xlu1 %1151 }
 0x575   :  { %1502 = vlog2.f32 %v1152_v15 }
 0x578   :  { %v1154_v16 = vpop.xlane.xlu1 %1153 }
 0x579   :  { %1504 = vlog2.f32 %v1154_v16 }
 0x582   :  { %v1503_v17 = vpop.eup %1502 }
 0x583   :  { %v1156_v18 = vmul.f32 0.6931472, %v1503_v17 }
 0x585   :  { %v1159_v19 = vsub.f32 %v1145_v8, %v1156_v18 }
 0x586   :  { %v1505_v20 = vpop.eup %1504 }
 0x587   :  { %v1158_v21 = vmul.f32 0.6931472, %v1505_v20  ;;  %1161 = vst [vmem:[#allocation13] sm:$0xff] %v1159_v19 }
 0x589   :  { %v1160_v22 = vsub.f32 %v1146_v11, %v1158_v21 }
 0x58b   :  { %1162 = vst [vmem:[#allocation13 + $0x8] sm:$0xff] %v1160_v22 }
 0x58c   :  { %1637 = shalt.err (!%p1634_p6)
}
 0x58d   :  { %1174 = dma.vmem_to_hbm [thread:$0]  %s1169_s14, 256, %s1808_s11, [#allocation4], %s1657_s20, %s1657_s20, %s1658_s21  }
 0x58e   :  { %1654 = dma.done.wait [#allocation4], 256  }
 0x58f   :  { %1655 = vsyncadd [#allocation4], 4294967040 }
 0x590   :  { %1178 = vsyncpa [#allocation3], 1 }
 0x591   :  { %1179 = vsyncpa [#allocation6], 1 }
 0x592   :  { %1180 = vsyncpa [#allocation9], 1 }
 0x593   :  { %1181 = vsyncpa [#allocation12], 1 }
 0x594   :  { %1182 = vsyncpa [#allocation4], 1 }

</bundles_post_ra>
